<compile_context>
chip_gen: v7x
topology: tpu7x:2x2x1
jax: 0.10.0
libtpu: 0.0.40
codegen_flags: <defaults>
</compile_context>

<pallas_src>
import math
import jax
import jax.numpy as jnp
import numpy as np
from jax import lax
from jax.experimental import pallas as pl
from jax.experimental.pallas import tpu as pltpu


# ----------------------------- in-kernel helpers -----------------------------

def _layer_norm(x, gamma, beta, eps):
    mean = jnp.mean(x, axis=-1, keepdims=True)
    var = jnp.mean((x - mean) ** 2, axis=-1, keepdims=True)
    return (x - mean) * lax.rsqrt(var + eps) * gamma + beta


def _softmax(s):
    m = jnp.max(s, axis=-1, keepdims=True)
    e = jnp.exp(s - m)
    inv = pl.reciprocal(jnp.sum(e, axis=-1, keepdims=True), approx=True)
    return e * inv


# --------------------------- fused encoder kernel -----------------------------

def make_fused_encoder_kernel(num_layers, n_head):
    def kernel(x_ref, pe_ref, mask_ref,
               g1_ref, be1_ref,
               wqkv_ref, bqkv_ref,
               wo_ref, bo_ref,
               g2_ref, be2_ref,
               w1_ref, b1_ref, w2_ref, b2_ref,
               fg_ref, fb_ref,
               out_ref):
        # x: (S, E)   pe: (1, E) (batch-indexed positional quirk)   mask: (1, S)
        x = x_ref[0] + pe_ref[0]
        mask = mask_ref[0]
        E = x.shape[-1]
        d_head = E // n_head
        scale = 1.0 / math.sqrt(d_head)
        # contract last dims of both operands -> q @ k^T without materializing k.T
        qk_dn = (((1,), (1,)), ((), ()))

        for l in range(num_layers):                     # static unroll over layers
            # ---- self-attention sub-block (pre-norm) ----
            h = _layer_norm(x, g1_ref[l], be1_ref[l], 1e-5)
            # fused QKV projection: one (S,E)@(E,3E) MXU dot per layer
            qkv = (jnp.dot(h, wqkv_ref[l], preferred_element_type=jnp.float32)
                   + bqkv_ref[l])
            q = qkv[:, 0 * E:1 * E] * scale
            k = qkv[:, 1 * E:2 * E]
            v = qkv[:, 2 * E:3 * E]

            heads = []
            for hd in range(n_head):                    # static head loop
                sl = slice(hd * d_head, (hd + 1) * d_head)
                s = lax.dot_general(q[:, sl], k[:, sl], qk_dn,
                                    preferred_element_type=jnp.float32) + mask
                p = _softmax(s)
                heads.append(jnp.dot(p, v[:, sl],
                                     preferred_element_type=jnp.float32))
            o = jnp.concatenate(heads, axis=-1)         # (S, E): concat heads once
            # single out-projection dot (no per-head accumulation chain)
            x = x + jnp.dot(o, wo_ref[l], preferred_element_type=jnp.float32) + bo_ref[l]

            # ---- feed-forward sub-block (pre-norm) ----
            h2 = _layer_norm(x, g2_ref[l], be2_ref[l], 1e-5)
            f = jnp.maximum(
                jnp.dot(h2, w1_ref[l], preferred_element_type=jnp.float32) + b1_ref[l],
                0.0)
            x = x + jnp.dot(f, w2_ref[l], preferred_element_type=jnp.float32) + b2_ref[l]

        # fused final LayerNorm (eps=1e-6) -> only HBM write of the whole pass
        out_ref[0] = _layer_norm(x, fg_ref[...], fb_ref[...], 1e-6)

    return kernel


def encoder_forward_pallas(x, pad_mask, layer_params, final_g, final_b, n_head, pe):
    B, S, E = x.shape
    L = len(layer_params)
    FF = layer_params[0]["w1"].shape[1]

    # PositionalEncoder quirk (batch_first inputs): pe indexed by BATCH index,
    # broadcast over the sequence axis -- reproduced exactly.
    pe_b = pe[:B]                                                     # (B, 1, E)
    mask_add = jnp.where(pad_mask, -1e9, 0.0).astype(jnp.float32)[:, None, :]  # (B,1,S)

    # Stack per-layer weights into leading-L arrays so a single pallas_call
    # carries every layer (weights stay VMEM-resident across the layer loop).
    st = {k: jnp.stack([p[k] for p in layer_params]) for k in layer_params[0]}
    # Fuse Q/K/V projections into one (L, E, 3E) weight and (L, 1, 3E) bias.
    wqkv = jnp.concatenate([st["wq"], st["wk"], st["wv"]], axis=-1)
    bqkv = jnp.concatenate([st["bq"], st["bk"], st["bv"]], axis=-1)

    def rep(shape):                       # weight blocks: same full block every step
        zeros = (0,) * len(shape)
        return pl.BlockSpec(shape, lambda b, _z=zeros: _z)

    in_specs = [
        pl.BlockSpec((1, S, E), lambda b: (b, 0, 0)),   # x (one batch element)
        pl.BlockSpec((1, 1, E), lambda b: (b, 0, 0)),   # pe (batch-indexed quirk)
        pl.BlockSpec((1, 1, S), lambda b: (b, 0, 0)),   # additive key-pad mask
        rep((L, 1, E)), rep((L, 1, E)),                 # ln1 gamma/beta
        rep((L, E, 3 * E)), rep((L, 1, 3 * E)),         # fused Wqkv, bqkv
        rep((L, E, E)), rep((L, 1, E)),                 # Wo, bo
        rep((L, 1, E)), rep((L, 1, E)),                 # ln2 gamma/beta
        rep((L, E, FF)), rep((L, 1, FF)),               # W1, b1
        rep((L, FF, E)), rep((L, 1, E)),                # W2, b2
        rep((1, E)), rep((1, E)),                       # final LN gamma/beta
    ]

    return pl.pallas_call(
        make_fused_encoder_kernel(L, n_head),
        out_shape=jax.ShapeDtypeStruct((B, S, E), jnp.float32),
        grid=(B,),
        in_specs=in_specs,
        out_specs=pl.BlockSpec((1, S, E), lambda b: (b, 0, 0)),
        compiler_params=pltpu.CompilerParams(
            dimension_semantics=("parallel",)),         # batch -> both TCs (v7x)
    )(x, pe_b, mask_add,
      st["g1"], st["be1"],
      wqkv, bqkv,
      st["wo"], st["bo"],
      st["g2"], st["be2"],
      st["w1"], st["b1"], st["w2"], st["b2"],
      final_g, final_b)


# ------------------------------ positional table -------------------------------

def make_pe(max_len, d_model):
    position = jnp.arange(max_len, dtype=jnp.float32)[:, None]
    div_term = jnp.exp(jnp.arange(0, d_model, 2, dtype=jnp.float32)
                       * (-math.log(10000.0) / d_model))
    pe = jnp.zeros((max_len, 1, d_model), jnp.float32)
    pe = pe.at[:, 0, 0::2].set(jnp.sin(position * div_term))
    pe = pe.at[:, 0, 1::2].set(jnp.cos(position * div_term))
    return pe


# ------------------------------ pure-JAX reference ----------------------------

def encoder_reference(x, pad_mask, layer_params, final_g, final_b, n_head, pe):
    B, S, E = x.shape
    d = E // n_head
    x = x + pe[:B]
    mask_add = jnp.where(pad_mask, -1e9, 0.0).astype(jnp.float32)[:, None, None, :]
    for p in layer_params:
        h = _layer_norm(x, p["g1"], p["be1"], 1e-5)
        q = (h @ p["wq"] + p["bq"]).reshape(B, S, n_head, d).transpose(0, 2, 1, 3)
        k = (h @ p["wk"] + p["bk"]).reshape(B, S, n_head, d).transpose(0, 2, 1, 3)
        v = (h @ p["wv"] + p["bv"]).reshape(B, S, n_head, d).transpose(0, 2, 1, 3)
        s = jnp.einsum("bhqd,bhkd->bhqk", q / math.sqrt(d), k) + mask_add
        a = jax.nn.softmax(s, axis=-1)
        o = jnp.einsum("bhqk,bhkd->bhqd", a, v).transpose(0, 2, 1, 3).reshape(B, S, E)
        x = x + (o @ p["wo"] + p["bo"])
        h2 = _layer_norm(x, p["g2"], p["be2"], 1e-5)
        f = jnp.maximum(h2 @ p["w1"] + p["b1"], 0.0) @ p["w2"] + p["b2"]
        x = x + f
    return _layer_norm(x, final_g, final_b, 1e-6)


# ------------------------------------ main ------------------------------------

def init_layer_params(key, E, FF, scale=0.1):
    ks = jax.random.split(key, 12)
    n = lambda k, s: scale * jax.random.normal(k, s, jnp.float32)
    return dict(
        g1=jnp.ones((1, E), jnp.float32), be1=jnp.zeros((1, E), jnp.float32),
        wq=n(ks[0], (E, E)), bq=n(ks[1], (1, E)),
        wk=n(ks[2], (E, E)), bk=n(ks[3], (1, E)),
        wv=n(ks[4], (E, E)), bv=n(ks[5], (1, E)),
        wo=n(ks[6], (E, E)), bo=n(ks[7], (1, E)),
        g2=jnp.ones((1, E), jnp.float32), be2=jnp.zeros((1, E), jnp.float32),
        w1=n(ks[8], (E, FF)), b1=n(ks[9], (1, FF)),
        w2=n(ks[10], (FF, E)), b2=n(ks[11], (1, E)),
    )


if __name__ == "__main__":
    # Encoder(embedding_dim=32, num_layers=2, n_head=4, ff_size=64, drop_p=0.1)
    B, S, E, H, FF, L = 2, 8, 32, 4, 64, 2

    key = jax.random.PRNGKey(0)
    kx, *lkeys = jax.random.split(key, L + 1)

    embedded_frames = 0.5 * jax.random.normal(kx, (B, S, E), jnp.float32)
    frames_padding_mask = jnp.array(
        [[False, False, False, False, False, False, True, True],
         [False, False, False, False, False, True, True, True]])

    layer_params = [init_layer_params(lkeys[i], E, FF) for i in range(L)]
    final_g = jnp.ones((1, E), jnp.float32)
    final_b = jnp.zeros((1, E), jnp.float32)
    pe = make_pe(5000, E)

    # TODO(synk): dropout layers are identity (eval mode); training-mode dropout
    # would need pltpu.prng_* and is intentionally not implemented here.

    out = encoder_forward_pallas(embedded_frames, frames_padding_mask,
                                 layer_params, final_g, final_b, H, pe)
    out = jax.block_until_ready(out)

    ref = encoder_reference(embedded_frames, frames_padding_mask,
                            layer_params, final_g, final_b, H, pe)
    np.testing.assert_allclose(np.asarray(out), np.asarray(ref),
                               rtol=1e-2, atol=1e-2)
    assert out.shape == (B, S, E) and bool(jnp.all(jnp.isfinite(out)))
    print("KERNEL_OK")
</pallas_src>

<mosaic_0001>
module attributes {stable_mosaic.version = 11 : i64} {
  func.func @kernel(%arg0: i32, %arg1: memref<1x8x32xf32, #tpu.memory_space<vmem>>, %arg2: memref<1x1x32xf32, #tpu.memory_space<vmem>>, %arg3: memref<1x1x8xf32, #tpu.memory_space<vmem>>, %arg4: memref<2x1x32xf32, #tpu.memory_space<vmem>>, %arg5: memref<2x1x32xf32, #tpu.memory_space<vmem>>, %arg6: memref<2x32x96xf32, #tpu.memory_space<vmem>>, %arg7: memref<2x1x96xf32, #tpu.memory_space<vmem>>, %arg8: memref<2x32x32xf32, #tpu.memory_space<vmem>>, %arg9: memref<2x1x32xf32, #tpu.memory_space<vmem>>, %arg10: memref<2x1x32xf32, #tpu.memory_space<vmem>>, %arg11: memref<2x1x32xf32, #tpu.memory_space<vmem>>, %arg12: memref<2x32x64xf32, #tpu.memory_space<vmem>>, %arg13: memref<2x1x64xf32, #tpu.memory_space<vmem>>, %arg14: memref<2x64x32xf32, #tpu.memory_space<vmem>>, %arg15: memref<2x1x32xf32, #tpu.memory_space<vmem>>, %arg16: memref<1x32xf32, #tpu.memory_space<vmem>>, %arg17: memref<1x32xf32, #tpu.memory_space<vmem>>, %arg18: memref<1x8x32xf32, #tpu.memory_space<vmem>>) attributes {dimension_semantics = [#tpu.dimension_semantics<parallel>], iteration_bounds = array<i64: 2>, scalar_prefetch = 0 : i64, scratch_operands = 0 : i64, tpu.core_type = #tpu.core_type<tc>, window_params = [{transform_indices = @transform_0, window_bounds = array<i64: 1, 8, 32>}, {transform_indices = @transform_1, window_bounds = array<i64: 1, 1, 32>}, {transform_indices = @transform_2, window_bounds = array<i64: 1, 1, 8>}, {pipeline_mode = #tpu.pipeline_mode<synchronous>, transform_indices = @transform_3, window_bounds = array<i64: 2, 1, 32>}, {pipeline_mode = #tpu.pipeline_mode<synchronous>, transform_indices = @transform_4, window_bounds = array<i64: 2, 1, 32>}, {pipeline_mode = #tpu.pipeline_mode<synchronous>, transform_indices = @transform_5, window_bounds = array<i64: 2, 32, 96>}, {pipeline_mode = #tpu.pipeline_mode<synchronous>, transform_indices = @transform_6, window_bounds = array<i64: 2, 1, 96>}, {pipeline_mode = #tpu.pipeline_mode<synchronous>, transform_indices = @transform_7, window_bounds = array<i64: 2, 32, 32>}, {pipeline_mode = #tpu.pipeline_mode<synchronous>, transform_indices = @transform_8, window_bounds = array<i64: 2, 1, 32>}, {pipeline_mode = #tpu.pipeline_mode<synchronous>, transform_indices = @transform_9, window_bounds = array<i64: 2, 1, 32>}, {pipeline_mode = #tpu.pipeline_mode<synchronous>, transform_indices = @transform_10, window_bounds = array<i64: 2, 1, 32>}, {pipeline_mode = #tpu.pipeline_mode<synchronous>, transform_indices = @transform_11, window_bounds = array<i64: 2, 32, 64>}, {pipeline_mode = #tpu.pipeline_mode<synchronous>, transform_indices = @transform_12, window_bounds = array<i64: 2, 1, 64>}, {pipeline_mode = #tpu.pipeline_mode<synchronous>, transform_indices = @transform_13, window_bounds = array<i64: 2, 64, 32>}, {pipeline_mode = #tpu.pipeline_mode<synchronous>, transform_indices = @transform_14, window_bounds = array<i64: 2, 1, 32>}, {pipeline_mode = #tpu.pipeline_mode<synchronous>, transform_indices = @transform_15, window_bounds = array<i64: 1, 32>}, {pipeline_mode = #tpu.pipeline_mode<synchronous>, transform_indices = @transform_16, window_bounds = array<i64: 1, 32>}, {transform_indices = @transform_17, window_bounds = array<i64: 1, 8, 32>}]} {
    %c0 = arith.constant 0 : index
    %c0_0 = arith.constant 0 : index
    %c0_1 = arith.constant 0 : index
    %0 = vector.load %arg1[%c0, %c0_0, %c0_1] : memref<1x8x32xf32, #tpu.memory_space<vmem>>, vector<1x8x32xf32>
    %1 = vector.shape_cast %0 : vector<1x8x32xf32> to vector<8x32xf32>
    %c0_2 = arith.constant 0 : index
    %c0_3 = arith.constant 0 : index
    %c0_4 = arith.constant 0 : index
    %2 = vector.load %arg2[%c0_2, %c0_3, %c0_4] : memref<1x1x32xf32, #tpu.memory_space<vmem>>, vector<1x1x32xf32>
    %3 = vector.shape_cast %2 : vector<1x1x32xf32> to vector<1x32xf32>
    %4 = vector.broadcast %3 : vector<1x32xf32> to vector<8x32xf32>
    %5 = arith.addf %1, %4 : vector<8x32xf32>
    %c0_5 = arith.constant 0 : index
    %c0_6 = arith.constant 0 : index
    %c0_7 = arith.constant 0 : index
    %6 = vector.load %arg3[%c0_5, %c0_6, %c0_7] : memref<1x1x8xf32, #tpu.memory_space<vmem>>, vector<1x1x8xf32>
    %7 = vector.shape_cast %6 : vector<1x1x8xf32> to vector<1x8xf32>
    %c0_8 = arith.constant 0 : index
    %c0_9 = arith.constant 0 : index
    %c0_10 = arith.constant 0 : index
    %8 = vector.load %arg4[%c0_8, %c0_9, %c0_10] : memref<2x1x32xf32, #tpu.memory_space<vmem>>, vector<1x1x32xf32>
    %9 = vector.shape_cast %8 : vector<1x1x32xf32> to vector<1x32xf32>
    %c0_11 = arith.constant 0 : index
    %c0_12 = arith.constant 0 : index
    %c0_13 = arith.constant 0 : index
    %10 = vector.load %arg5[%c0_11, %c0_12, %c0_13] : memref<2x1x32xf32, #tpu.memory_space<vmem>>, vector<1x1x32xf32>
    %11 = vector.shape_cast %10 : vector<1x1x32xf32> to vector<1x32xf32>
    %cst = arith.constant dense<0.000000e+00> : vector<8xf32>
    %12 = vector.multi_reduction <add>, %5, %cst [1] : vector<8x32xf32> to vector<8xf32>
    %13 = vector.shape_cast %12 : vector<8xf32> to vector<8x1xf32>
    %cst_14 = arith.constant 3.200000e+01 : f32
    %14 = vector.broadcast %cst_14 : f32 to vector<8x1xf32>
    %15 = arith.divf %13, %14 : vector<8x1xf32>
    %16 = vector.broadcast %15 : vector<8x1xf32> to vector<8x32xf32>
    %17 = arith.subf %5, %16 : vector<8x32xf32>
    %18 = arith.mulf %17, %17 : vector<8x32xf32>
    %cst_15 = arith.constant dense<0.000000e+00> : vector<8xf32>
    %19 = vector.multi_reduction <add>, %18, %cst_15 [1] : vector<8x32xf32> to vector<8xf32>
    %20 = vector.shape_cast %19 : vector<8xf32> to vector<8x1xf32>
    %cst_16 = arith.constant 3.200000e+01 : f32
    %21 = vector.broadcast %cst_16 : f32 to vector<8x1xf32>
    %22 = arith.divf %20, %21 : vector<8x1xf32>
    %23 = vector.broadcast %15 : vector<8x1xf32> to vector<8x32xf32>
    %24 = arith.subf %5, %23 : vector<8x32xf32>
    %cst_17 = arith.constant 9.99999974E-6 : f32
    %25 = vector.broadcast %cst_17 : f32 to vector<8x1xf32>
    %26 = arith.addf %22, %25 : vector<8x1xf32>
    %27 = math.rsqrt %26 : vector<8x1xf32>
    %28 = vector.broadcast %27 : vector<8x1xf32> to vector<8x32xf32>
    %29 = arith.mulf %24, %28 : vector<8x32xf32>
    %30 = vector.broadcast %9 : vector<1x32xf32> to vector<8x32xf32>
    %31 = arith.mulf %29, %30 : vector<8x32xf32>
    %32 = vector.broadcast %11 : vector<1x32xf32> to vector<8x32xf32>
    %33 = arith.addf %31, %32 : vector<8x32xf32>
    %c0_18 = arith.constant 0 : index
    %c0_19 = arith.constant 0 : index
    %c0_20 = arith.constant 0 : index
    %34 = vector.load %arg6[%c0_18, %c0_19, %c0_20] : memref<2x32x96xf32, #tpu.memory_space<vmem>>, vector<1x32x96xf32>
    %35 = vector.shape_cast %34 : vector<1x32x96xf32> to vector<32x96xf32>
    %cst_21 = arith.constant dense<0.000000e+00> : vector<8x96xf32>
    %36 = tpu.matmul %33, %35, %cst_21 {dimension_numbers = #tpu.dot_dimension_numbers<[1], [0], [0], [1], [0, 0, 1, 1], [], []>} : vector<8x32xf32>, vector<32x96xf32>, vector<8x96xf32> -> vector<8x96xf32>
    %c0_22 = arith.constant 0 : index
    %c0_23 = arith.constant 0 : index
    %c0_24 = arith.constant 0 : index
    %37 = vector.load %arg7[%c0_22, %c0_23, %c0_24] : memref<2x1x96xf32, #tpu.memory_space<vmem>>, vector<1x1x96xf32>
    %38 = vector.shape_cast %37 : vector<1x1x96xf32> to vector<1x96xf32>
    %39 = vector.broadcast %38 : vector<1x96xf32> to vector<8x96xf32>
    %40 = arith.addf %36, %39 : vector<8x96xf32>
    %41 = vector.extract_strided_slice %40 {offsets = [0, 0], sizes = [8, 32], strides = [1, 1]} : vector<8x96xf32> to vector<8x32xf32>
    %cst_25 = arith.constant 0.353553385 : f32
    %42 = vector.broadcast %cst_25 : f32 to vector<8x32xf32>
    %43 = arith.mulf %41, %42 : vector<8x32xf32>
    %44 = vector.extract_strided_slice %40 {offsets = [0, 32], sizes = [8, 32], strides = [1, 1]} : vector<8x96xf32> to vector<8x32xf32>
    %45 = vector.extract_strided_slice %40 {offsets = [0, 64], sizes = [8, 32], strides = [1, 1]} : vector<8x96xf32> to vector<8x32xf32>
    %46 = vector.extract_strided_slice %43 {offsets = [0, 0], sizes = [8, 8], strides = [1, 1]} : vector<8x32xf32> to vector<8x8xf32>
    %47 = vector.extract_strided_slice %44 {offsets = [0, 0], sizes = [8, 8], strides = [1, 1]} : vector<8x32xf32> to vector<8x8xf32>
    %cst_26 = arith.constant dense<0.000000e+00> : vector<8x8xf32>
    %48 = tpu.matmul %46, %47, %cst_26 {dimension_numbers = #tpu.dot_dimension_numbers<[1], [1], [0], [0], [0, 0, 1, 0], [], []>} : vector<8x8xf32>, vector<8x8xf32>, vector<8x8xf32> -> vector<8x8xf32>
    %49 = vector.broadcast %7 : vector<1x8xf32> to vector<8x8xf32>
    %50 = arith.addf %48, %49 : vector<8x8xf32>
    %cst_27 = arith.constant dense<0xFF800000> : vector<8xf32>
    %51 = vector.multi_reduction <maximumf>, %50, %cst_27 [1] : vector<8x8xf32> to vector<8xf32>
    %52 = vector.shape_cast %51 : vector<8xf32> to vector<8x1xf32>
    %53 = vector.broadcast %52 : vector<8x1xf32> to vector<8x8xf32>
    %54 = arith.subf %50, %53 : vector<8x8xf32>
    %55 = math.exp %54 : vector<8x8xf32>
    %cst_28 = arith.constant dense<0.000000e+00> : vector<8xf32>
    %56 = vector.multi_reduction <add>, %55, %cst_28 [1] : vector<8x8xf32> to vector<8xf32>
    %57 = vector.shape_cast %56 : vector<8xf32> to vector<8x1xf32>
    %58 = tpu.reciprocal %57 {approx = true} : vector<8x1xf32> -> vector<8x1xf32>
    %59 = vector.broadcast %58 : vector<8x1xf32> to vector<8x8xf32>
    %60 = arith.mulf %55, %59 : vector<8x8xf32>
    %61 = vector.extract_strided_slice %45 {offsets = [0, 0], sizes = [8, 8], strides = [1, 1]} : vector<8x32xf32> to vector<8x8xf32>
    %cst_29 = arith.constant dense<0.000000e+00> : vector<8x8xf32>
    %62 = tpu.matmul %60, %61, %cst_29 {dimension_numbers = #tpu.dot_dimension_numbers<[1], [0], [0], [1], [0, 0, 1, 1], [], []>} : vector<8x8xf32>, vector<8x8xf32>, vector<8x8xf32> -> vector<8x8xf32>
    %63 = vector.extract_strided_slice %43 {offsets = [0, 8], sizes = [8, 8], strides = [1, 1]} : vector<8x32xf32> to vector<8x8xf32>
    %64 = vector.extract_strided_slice %44 {offsets = [0, 8], sizes = [8, 8], strides = [1, 1]} : vector<8x32xf32> to vector<8x8xf32>
    %cst_30 = arith.constant dense<0.000000e+00> : vector<8x8xf32>
    %65 = tpu.matmul %63, %64, %cst_30 {dimension_numbers = #tpu.dot_dimension_numbers<[1], [1], [0], [0], [0, 0, 1, 0], [], []>} : vector<8x8xf32>, vector<8x8xf32>, vector<8x8xf32> -> vector<8x8xf32>
    %66 = vector.broadcast %7 : vector<1x8xf32> to vector<8x8xf32>
    %67 = arith.addf %65, %66 : vector<8x8xf32>
    %cst_31 = arith.constant dense<0xFF800000> : vector<8xf32>
    %68 = vector.multi_reduction <maximumf>, %67, %cst_31 [1] : vector<8x8xf32> to vector<8xf32>
    %69 = vector.shape_cast %68 : vector<8xf32> to vector<8x1xf32>
    %70 = vector.broadcast %69 : vector<8x1xf32> to vector<8x8xf32>
    %71 = arith.subf %67, %70 : vector<8x8xf32>
    %72 = math.exp %71 : vector<8x8xf32>
    %cst_32 = arith.constant dense<0.000000e+00> : vector<8xf32>
    %73 = vector.multi_reduction <add>, %72, %cst_32 [1] : vector<8x8xf32> to vector<8xf32>
    %74 = vector.shape_cast %73 : vector<8xf32> to vector<8x1xf32>
    %75 = tpu.reciprocal %74 {approx = true} : vector<8x1xf32> -> vector<8x1xf32>
    %76 = vector.broadcast %75 : vector<8x1xf32> to vector<8x8xf32>
    %77 = arith.mulf %72, %76 : vector<8x8xf32>
    %78 = vector.extract_strided_slice %45 {offsets = [0, 8], sizes = [8, 8], strides = [1, 1]} : vector<8x32xf32> to vector<8x8xf32>
    %cst_33 = arith.constant dense<0.000000e+00> : vector<8x8xf32>
    %79 = tpu.matmul %77, %78, %cst_33 {dimension_numbers = #tpu.dot_dimension_numbers<[1], [0], [0], [1], [0, 0, 1, 1], [], []>} : vector<8x8xf32>, vector<8x8xf32>, vector<8x8xf32> -> vector<8x8xf32>
    %80 = vector.extract_strided_slice %43 {offsets = [0, 16], sizes = [8, 8], strides = [1, 1]} : vector<8x32xf32> to vector<8x8xf32>
    %81 = vector.extract_strided_slice %44 {offsets = [0, 16], sizes = [8, 8], strides = [1, 1]} : vector<8x32xf32> to vector<8x8xf32>
    %cst_34 = arith.constant dense<0.000000e+00> : vector<8x8xf32>
    %82 = tpu.matmul %80, %81, %cst_34 {dimension_numbers = #tpu.dot_dimension_numbers<[1], [1], [0], [0], [0, 0, 1, 0], [], []>} : vector<8x8xf32>, vector<8x8xf32>, vector<8x8xf32> -> vector<8x8xf32>
    %83 = vector.broadcast %7 : vector<1x8xf32> to vector<8x8xf32>
    %84 = arith.addf %82, %83 : vector<8x8xf32>
    %cst_35 = arith.constant dense<0xFF800000> : vector<8xf32>
    %85 = vector.multi_reduction <maximumf>, %84, %cst_35 [1] : vector<8x8xf32> to vector<8xf32>
    %86 = vector.shape_cast %85 : vector<8xf32> to vector<8x1xf32>
    %87 = vector.broadcast %86 : vector<8x1xf32> to vector<8x8xf32>
    %88 = arith.subf %84, %87 : vector<8x8xf32>
    %89 = math.exp %88 : vector<8x8xf32>
    %cst_36 = arith.constant dense<0.000000e+00> : vector<8xf32>
    %90 = vector.multi_reduction <add>, %89, %cst_36 [1] : vector<8x8xf32> to vector<8xf32>
    %91 = vector.shape_cast %90 : vector<8xf32> to vector<8x1xf32>
    %92 = tpu.reciprocal %91 {approx = true} : vector<8x1xf32> -> vector<8x1xf32>
    %93 = vector.broadcast %92 : vector<8x1xf32> to vector<8x8xf32>
    %94 = arith.mulf %89, %93 : vector<8x8xf32>
    %95 = vector.extract_strided_slice %45 {offsets = [0, 16], sizes = [8, 8], strides = [1, 1]} : vector<8x32xf32> to vector<8x8xf32>
    %cst_37 = arith.constant dense<0.000000e+00> : vector<8x8xf32>
    %96 = tpu.matmul %94, %95, %cst_37 {dimension_numbers = #tpu.dot_dimension_numbers<[1], [0], [0], [1], [0, 0, 1, 1], [], []>} : vector<8x8xf32>, vector<8x8xf32>, vector<8x8xf32> -> vector<8x8xf32>
    %97 = vector.extract_strided_slice %43 {offsets = [0, 24], sizes = [8, 8], strides = [1, 1]} : vector<8x32xf32> to vector<8x8xf32>
    %98 = vector.extract_strided_slice %44 {offsets = [0, 24], sizes = [8, 8], strides = [1, 1]} : vector<8x32xf32> to vector<8x8xf32>
    %cst_38 = arith.constant dense<0.000000e+00> : vector<8x8xf32>
    %99 = tpu.matmul %97, %98, %cst_38 {dimension_numbers = #tpu.dot_dimension_numbers<[1], [1], [0], [0], [0, 0, 1, 0], [], []>} : vector<8x8xf32>, vector<8x8xf32>, vector<8x8xf32> -> vector<8x8xf32>
    %100 = vector.broadcast %7 : vector<1x8xf32> to vector<8x8xf32>
    %101 = arith.addf %99, %100 : vector<8x8xf32>
    %cst_39 = arith.constant dense<0xFF800000> : vector<8xf32>
    %102 = vector.multi_reduction <maximumf>, %101, %cst_39 [1] : vector<8x8xf32> to vector<8xf32>
    %103 = vector.shape_cast %102 : vector<8xf32> to vector<8x1xf32>
    %104 = vector.broadcast %103 : vector<8x1xf32> to vector<8x8xf32>
    %105 = arith.subf %101, %104 : vector<8x8xf32>
    %106 = math.exp %105 : vector<8x8xf32>
    %cst_40 = arith.constant dense<0.000000e+00> : vector<8xf32>
    %107 = vector.multi_reduction <add>, %106, %cst_40 [1] : vector<8x8xf32> to vector<8xf32>
    %108 = vector.shape_cast %107 : vector<8xf32> to vector<8x1xf32>
    %109 = tpu.reciprocal %108 {approx = true} : vector<8x1xf32> -> vector<8x1xf32>
    %110 = vector.broadcast %109 : vector<8x1xf32> to vector<8x8xf32>
    %111 = arith.mulf %106, %110 : vector<8x8xf32>
    %112 = vector.extract_strided_slice %45 {offsets = [0, 24], sizes = [8, 8], strides = [1, 1]} : vector<8x32xf32> to vector<8x8xf32>
    %cst_41 = arith.constant dense<0.000000e+00> : vector<8x8xf32>
    %113 = tpu.matmul %111, %112, %cst_41 {dimension_numbers = #tpu.dot_dimension_numbers<[1], [0], [0], [1], [0, 0, 1, 1], [], []>} : vector<8x8xf32>, vector<8x8xf32>, vector<8x8xf32> -> vector<8x8xf32>
    %114 = tpu.concatenate %62, %79, %96, %113 in 1 : vector<8x8xf32>, vector<8x8xf32>, vector<8x8xf32>, vector<8x8xf32> -> vector<8x32xf32>
    %c0_42 = arith.constant 0 : index
    %c0_43 = arith.constant 0 : index
    %c0_44 = arith.constant 0 : index
    %115 = vector.load %arg8[%c0_42, %c0_43, %c0_44] : memref<2x32x32xf32, #tpu.memory_space<vmem>>, vector<1x32x32xf32>
    %116 = vector.shape_cast %115 : vector<1x32x32xf32> to vector<32x32xf32>
    %cst_45 = arith.constant dense<0.000000e+00> : vector<8x32xf32>
    %117 = tpu.matmul %114, %116, %cst_45 {dimension_numbers = #tpu.dot_dimension_numbers<[1], [0], [0], [1], [0, 0, 1, 1], [], []>} : vector<8x32xf32>, vector<32x32xf32>, vector<8x32xf32> -> vector<8x32xf32>
    %118 = arith.addf %5, %117 : vector<8x32xf32>
    %c0_46 = arith.constant 0 : index
    %c0_47 = arith.constant 0 : index
    %c0_48 = arith.constant 0 : index
    %119 = vector.load %arg9[%c0_46, %c0_47, %c0_48] : memref<2x1x32xf32, #tpu.memory_space<vmem>>, vector<1x1x32xf32>
    %120 = vector.shape_cast %119 : vector<1x1x32xf32> to vector<1x32xf32>
    %121 = vector.broadcast %120 : vector<1x32xf32> to vector<8x32xf32>
    %122 = arith.addf %118, %121 : vector<8x32xf32>
    %c0_49 = arith.constant 0 : index
    %c0_50 = arith.constant 0 : index
    %c0_51 = arith.constant 0 : index
    %123 = vector.load %arg10[%c0_49, %c0_50, %c0_51] : memref<2x1x32xf32, #tpu.memory_space<vmem>>, vector<1x1x32xf32>
    %124 = vector.shape_cast %123 : vector<1x1x32xf32> to vector<1x32xf32>
    %c0_52 = arith.constant 0 : index
    %c0_53 = arith.constant 0 : index
    %c0_54 = arith.constant 0 : index
    %125 = vector.load %arg11[%c0_52, %c0_53, %c0_54] : memref<2x1x32xf32, #tpu.memory_space<vmem>>, vector<1x1x32xf32>
    %126 = vector.shape_cast %125 : vector<1x1x32xf32> to vector<1x32xf32>
    %cst_55 = arith.constant dense<0.000000e+00> : vector<8xf32>
    %127 = vector.multi_reduction <add>, %122, %cst_55 [1] : vector<8x32xf32> to vector<8xf32>
    %128 = vector.shape_cast %127 : vector<8xf32> to vector<8x1xf32>
    %cst_56 = arith.constant 3.200000e+01 : f32
    %129 = vector.broadcast %cst_56 : f32 to vector<8x1xf32>
    %130 = arith.divf %128, %129 : vector<8x1xf32>
    %131 = vector.broadcast %130 : vector<8x1xf32> to vector<8x32xf32>
    %132 = arith.subf %122, %131 : vector<8x32xf32>
    %133 = arith.mulf %132, %132 : vector<8x32xf32>
    %cst_57 = arith.constant dense<0.000000e+00> : vector<8xf32>
    %134 = vector.multi_reduction <add>, %133, %cst_57 [1] : vector<8x32xf32> to vector<8xf32>
    %135 = vector.shape_cast %134 : vector<8xf32> to vector<8x1xf32>
    %cst_58 = arith.constant 3.200000e+01 : f32
    %136 = vector.broadcast %cst_58 : f32 to vector<8x1xf32>
    %137 = arith.divf %135, %136 : vector<8x1xf32>
    %138 = vector.broadcast %130 : vector<8x1xf32> to vector<8x32xf32>
    %139 = arith.subf %122, %138 : vector<8x32xf32>
    %cst_59 = arith.constant 9.99999974E-6 : f32
    %140 = vector.broadcast %cst_59 : f32 to vector<8x1xf32>
    %141 = arith.addf %137, %140 : vector<8x1xf32>
    %142 = math.rsqrt %141 : vector<8x1xf32>
    %143 = vector.broadcast %142 : vector<8x1xf32> to vector<8x32xf32>
    %144 = arith.mulf %139, %143 : vector<8x32xf32>
    %145 = vector.broadcast %124 : vector<1x32xf32> to vector<8x32xf32>
    %146 = arith.mulf %144, %145 : vector<8x32xf32>
    %147 = vector.broadcast %126 : vector<1x32xf32> to vector<8x32xf32>
    %148 = arith.addf %146, %147 : vector<8x32xf32>
    %c0_60 = arith.constant 0 : index
    %c0_61 = arith.constant 0 : index
    %c0_62 = arith.constant 0 : index
    %149 = vector.load %arg12[%c0_60, %c0_61, %c0_62] : memref<2x32x64xf32, #tpu.memory_space<vmem>>, vector<1x32x64xf32>
    %150 = vector.shape_cast %149 : vector<1x32x64xf32> to vector<32x64xf32>
    %cst_63 = arith.constant dense<0.000000e+00> : vector<8x64xf32>
    %151 = tpu.matmul %148, %150, %cst_63 {dimension_numbers = #tpu.dot_dimension_numbers<[1], [0], [0], [1], [0, 0, 1, 1], [], []>} : vector<8x32xf32>, vector<32x64xf32>, vector<8x64xf32> -> vector<8x64xf32>
    %c0_64 = arith.constant 0 : index
    %c0_65 = arith.constant 0 : index
    %c0_66 = arith.constant 0 : index
    %152 = vector.load %arg13[%c0_64, %c0_65, %c0_66] : memref<2x1x64xf32, #tpu.memory_space<vmem>>, vector<1x1x64xf32>
    %153 = vector.shape_cast %152 : vector<1x1x64xf32> to vector<1x64xf32>
    %154 = vector.broadcast %153 : vector<1x64xf32> to vector<8x64xf32>
    %155 = arith.addf %151, %154 : vector<8x64xf32>
    %cst_67 = arith.constant 0.000000e+00 : f32
    %156 = vector.broadcast %cst_67 : f32 to vector<8x64xf32>
    %157 = arith.maximumf %155, %156 : vector<8x64xf32>
    %c0_68 = arith.constant 0 : index
    %c0_69 = arith.constant 0 : index
    %c0_70 = arith.constant 0 : index
    %158 = vector.load %arg14[%c0_68, %c0_69, %c0_70] : memref<2x64x32xf32, #tpu.memory_space<vmem>>, vector<1x64x32xf32>
    %159 = vector.shape_cast %158 : vector<1x64x32xf32> to vector<64x32xf32>
    %cst_71 = arith.constant dense<0.000000e+00> : vector<8x32xf32>
    %160 = tpu.matmul %157, %159, %cst_71 {dimension_numbers = #tpu.dot_dimension_numbers<[1], [0], [0], [1], [0, 0, 1, 1], [], []>} : vector<8x64xf32>, vector<64x32xf32>, vector<8x32xf32> -> vector<8x32xf32>
    %161 = arith.addf %122, %160 : vector<8x32xf32>
    %c0_72 = arith.constant 0 : index
    %c0_73 = arith.constant 0 : index
    %c0_74 = arith.constant 0 : index
    %162 = vector.load %arg15[%c0_72, %c0_73, %c0_74] : memref<2x1x32xf32, #tpu.memory_space<vmem>>, vector<1x1x32xf32>
    %163 = vector.shape_cast %162 : vector<1x1x32xf32> to vector<1x32xf32>
    %164 = vector.broadcast %163 : vector<1x32xf32> to vector<8x32xf32>
    %165 = arith.addf %161, %164 : vector<8x32xf32>
    %c1 = arith.constant 1 : index
    %c0_75 = arith.constant 0 : index
    %c0_76 = arith.constant 0 : index
    %166 = vector.load %arg4[%c1, %c0_75, %c0_76] : memref<2x1x32xf32, #tpu.memory_space<vmem>>, vector<1x1x32xf32>
    %167 = vector.shape_cast %166 : vector<1x1x32xf32> to vector<1x32xf32>
    %c1_77 = arith.constant 1 : index
    %c0_78 = arith.constant 0 : index
    %c0_79 = arith.constant 0 : index
    %168 = vector.load %arg5[%c1_77, %c0_78, %c0_79] : memref<2x1x32xf32, #tpu.memory_space<vmem>>, vector<1x1x32xf32>
    %169 = vector.shape_cast %168 : vector<1x1x32xf32> to vector<1x32xf32>
    %cst_80 = arith.constant dense<0.000000e+00> : vector<8xf32>
    %170 = vector.multi_reduction <add>, %165, %cst_80 [1] : vector<8x32xf32> to vector<8xf32>
    %171 = vector.shape_cast %170 : vector<8xf32> to vector<8x1xf32>
    %cst_81 = arith.constant 3.200000e+01 : f32
    %172 = vector.broadcast %cst_81 : f32 to vector<8x1xf32>
    %173 = arith.divf %171, %172 : vector<8x1xf32>
    %174 = vector.broadcast %173 : vector<8x1xf32> to vector<8x32xf32>
    %175 = arith.subf %165, %174 : vector<8x32xf32>
    %176 = arith.mulf %175, %175 : vector<8x32xf32>
    %cst_82 = arith.constant dense<0.000000e+00> : vector<8xf32>
    %177 = vector.multi_reduction <add>, %176, %cst_82 [1] : vector<8x32xf32> to vector<8xf32>
    %178 = vector.shape_cast %177 : vector<8xf32> to vector<8x1xf32>
    %cst_83 = arith.constant 3.200000e+01 : f32
    %179 = vector.broadcast %cst_83 : f32 to vector<8x1xf32>
    %180 = arith.divf %178, %179 : vector<8x1xf32>
    %181 = vector.broadcast %173 : vector<8x1xf32> to vector<8x32xf32>
    %182 = arith.subf %165, %181 : vector<8x32xf32>
    %cst_84 = arith.constant 9.99999974E-6 : f32
    %183 = vector.broadcast %cst_84 : f32 to vector<8x1xf32>
    %184 = arith.addf %180, %183 : vector<8x1xf32>
    %185 = math.rsqrt %184 : vector<8x1xf32>
    %186 = vector.broadcast %185 : vector<8x1xf32> to vector<8x32xf32>
    %187 = arith.mulf %182, %186 : vector<8x32xf32>
    %188 = vector.broadcast %167 : vector<1x32xf32> to vector<8x32xf32>
    %189 = arith.mulf %187, %188 : vector<8x32xf32>
    %190 = vector.broadcast %169 : vector<1x32xf32> to vector<8x32xf32>
    %191 = arith.addf %189, %190 : vector<8x32xf32>
    %c1_85 = arith.constant 1 : index
    %c0_86 = arith.constant 0 : index
    %c0_87 = arith.constant 0 : index
    %192 = vector.load %arg6[%c1_85, %c0_86, %c0_87] : memref<2x32x96xf32, #tpu.memory_space<vmem>>, vector<1x32x96xf32>
    %193 = vector.shape_cast %192 : vector<1x32x96xf32> to vector<32x96xf32>
    %cst_88 = arith.constant dense<0.000000e+00> : vector<8x96xf32>
    %194 = tpu.matmul %191, %193, %cst_88 {dimension_numbers = #tpu.dot_dimension_numbers<[1], [0], [0], [1], [0, 0, 1, 1], [], []>} : vector<8x32xf32>, vector<32x96xf32>, vector<8x96xf32> -> vector<8x96xf32>
    %c1_89 = arith.constant 1 : index
    %c0_90 = arith.constant 0 : index
    %c0_91 = arith.constant 0 : index
    %195 = vector.load %arg7[%c1_89, %c0_90, %c0_91] : memref<2x1x96xf32, #tpu.memory_space<vmem>>, vector<1x1x96xf32>
    %196 = vector.shape_cast %195 : vector<1x1x96xf32> to vector<1x96xf32>
    %197 = vector.broadcast %196 : vector<1x96xf32> to vector<8x96xf32>
    %198 = arith.addf %194, %197 : vector<8x96xf32>
    %199 = vector.extract_strided_slice %198 {offsets = [0, 0], sizes = [8, 32], strides = [1, 1]} : vector<8x96xf32> to vector<8x32xf32>
    %cst_92 = arith.constant 0.353553385 : f32
    %200 = vector.broadcast %cst_92 : f32 to vector<8x32xf32>
    %201 = arith.mulf %199, %200 : vector<8x32xf32>
    %202 = vector.extract_strided_slice %198 {offsets = [0, 32], sizes = [8, 32], strides = [1, 1]} : vector<8x96xf32> to vector<8x32xf32>
    %203 = vector.extract_strided_slice %198 {offsets = [0, 64], sizes = [8, 32], strides = [1, 1]} : vector<8x96xf32> to vector<8x32xf32>
    %204 = vector.extract_strided_slice %201 {offsets = [0, 0], sizes = [8, 8], strides = [1, 1]} : vector<8x32xf32> to vector<8x8xf32>
    %205 = vector.extract_strided_slice %202 {offsets = [0, 0], sizes = [8, 8], strides = [1, 1]} : vector<8x32xf32> to vector<8x8xf32>
    %cst_93 = arith.constant dense<0.000000e+00> : vector<8x8xf32>
    %206 = tpu.matmul %204, %205, %cst_93 {dimension_numbers = #tpu.dot_dimension_numbers<[1], [1], [0], [0], [0, 0, 1, 0], [], []>} : vector<8x8xf32>, vector<8x8xf32>, vector<8x8xf32> -> vector<8x8xf32>
    %207 = vector.broadcast %7 : vector<1x8xf32> to vector<8x8xf32>
    %208 = arith.addf %206, %207 : vector<8x8xf32>
    %cst_94 = arith.constant dense<0xFF800000> : vector<8xf32>
    %209 = vector.multi_reduction <maximumf>, %208, %cst_94 [1] : vector<8x8xf32> to vector<8xf32>
    %210 = vector.shape_cast %209 : vector<8xf32> to vector<8x1xf32>
    %211 = vector.broadcast %210 : vector<8x1xf32> to vector<8x8xf32>
    %212 = arith.subf %208, %211 : vector<8x8xf32>
    %213 = math.exp %212 : vector<8x8xf32>
    %cst_95 = arith.constant dense<0.000000e+00> : vector<8xf32>
    %214 = vector.multi_reduction <add>, %213, %cst_95 [1] : vector<8x8xf32> to vector<8xf32>
    %215 = vector.shape_cast %214 : vector<8xf32> to vector<8x1xf32>
    %216 = tpu.reciprocal %215 {approx = true} : vector<8x1xf32> -> vector<8x1xf32>
    %217 = vector.broadcast %216 : vector<8x1xf32> to vector<8x8xf32>
    %218 = arith.mulf %213, %217 : vector<8x8xf32>
    %219 = vector.extract_strided_slice %203 {offsets = [0, 0], sizes = [8, 8], strides = [1, 1]} : vector<8x32xf32> to vector<8x8xf32>
    %cst_96 = arith.constant dense<0.000000e+00> : vector<8x8xf32>
    %220 = tpu.matmul %218, %219, %cst_96 {dimension_numbers = #tpu.dot_dimension_numbers<[1], [0], [0], [1], [0, 0, 1, 1], [], []>} : vector<8x8xf32>, vector<8x8xf32>, vector<8x8xf32> -> vector<8x8xf32>
    %221 = vector.extract_strided_slice %201 {offsets = [0, 8], sizes = [8, 8], strides = [1, 1]} : vector<8x32xf32> to vector<8x8xf32>
    %222 = vector.extract_strided_slice %202 {offsets = [0, 8], sizes = [8, 8], strides = [1, 1]} : vector<8x32xf32> to vector<8x8xf32>
    %cst_97 = arith.constant dense<0.000000e+00> : vector<8x8xf32>
    %223 = tpu.matmul %221, %222, %cst_97 {dimension_numbers = #tpu.dot_dimension_numbers<[1], [1], [0], [0], [0, 0, 1, 0], [], []>} : vector<8x8xf32>, vector<8x8xf32>, vector<8x8xf32> -> vector<8x8xf32>
    %224 = vector.broadcast %7 : vector<1x8xf32> to vector<8x8xf32>
    %225 = arith.addf %223, %224 : vector<8x8xf32>
    %cst_98 = arith.constant dense<0xFF800000> : vector<8xf32>
    %226 = vector.multi_reduction <maximumf>, %225, %cst_98 [1] : vector<8x8xf32> to vector<8xf32>
    %227 = vector.shape_cast %226 : vector<8xf32> to vector<8x1xf32>
    %228 = vector.broadcast %227 : vector<8x1xf32> to vector<8x8xf32>
    %229 = arith.subf %225, %228 : vector<8x8xf32>
    %230 = math.exp %229 : vector<8x8xf32>
    %cst_99 = arith.constant dense<0.000000e+00> : vector<8xf32>
    %231 = vector.multi_reduction <add>, %230, %cst_99 [1] : vector<8x8xf32> to vector<8xf32>
    %232 = vector.shape_cast %231 : vector<8xf32> to vector<8x1xf32>
    %233 = tpu.reciprocal %232 {approx = true} : vector<8x1xf32> -> vector<8x1xf32>
    %234 = vector.broadcast %233 : vector<8x1xf32> to vector<8x8xf32>
    %235 = arith.mulf %230, %234 : vector<8x8xf32>
    %236 = vector.extract_strided_slice %203 {offsets = [0, 8], sizes = [8, 8], strides = [1, 1]} : vector<8x32xf32> to vector<8x8xf32>
    %cst_100 = arith.constant dense<0.000000e+00> : vector<8x8xf32>
    %237 = tpu.matmul %235, %236, %cst_100 {dimension_numbers = #tpu.dot_dimension_numbers<[1], [0], [0], [1], [0, 0, 1, 1], [], []>} : vector<8x8xf32>, vector<8x8xf32>, vector<8x8xf32> -> vector<8x8xf32>
    %238 = vector.extract_strided_slice %201 {offsets = [0, 16], sizes = [8, 8], strides = [1, 1]} : vector<8x32xf32> to vector<8x8xf32>
    %239 = vector.extract_strided_slice %202 {offsets = [0, 16], sizes = [8, 8], strides = [1, 1]} : vector<8x32xf32> to vector<8x8xf32>
    %cst_101 = arith.constant dense<0.000000e+00> : vector<8x8xf32>
    %240 = tpu.matmul %238, %239, %cst_101 {dimension_numbers = #tpu.dot_dimension_numbers<[1], [1], [0], [0], [0, 0, 1, 0], [], []>} : vector<8x8xf32>, vector<8x8xf32>, vector<8x8xf32> -> vector<8x8xf32>
    %241 = vector.broadcast %7 : vector<1x8xf32> to vector<8x8xf32>
    %242 = arith.addf %240, %241 : vector<8x8xf32>
    %cst_102 = arith.constant dense<0xFF800000> : vector<8xf32>
    %243 = vector.multi_reduction <maximumf>, %242, %cst_102 [1] : vector<8x8xf32> to vector<8xf32>
    %244 = vector.shape_cast %243 : vector<8xf32> to vector<8x1xf32>
    %245 = vector.broadcast %244 : vector<8x1xf32> to vector<8x8xf32>
    %246 = arith.subf %242, %245 : vector<8x8xf32>
    %247 = math.exp %246 : vector<8x8xf32>
    %cst_103 = arith.constant dense<0.000000e+00> : vector<8xf32>
    %248 = vector.multi_reduction <add>, %247, %cst_103 [1] : vector<8x8xf32> to vector<8xf32>
    %249 = vector.shape_cast %248 : vector<8xf32> to vector<8x1xf32>
    %250 = tpu.reciprocal %249 {approx = true} : vector<8x1xf32> -> vector<8x1xf32>
    %251 = vector.broadcast %250 : vector<8x1xf32> to vector<8x8xf32>
    %252 = arith.mulf %247, %251 : vector<8x8xf32>
    %253 = vector.extract_strided_slice %203 {offsets = [0, 16], sizes = [8, 8], strides = [1, 1]} : vector<8x32xf32> to vector<8x8xf32>
    %cst_104 = arith.constant dense<0.000000e+00> : vector<8x8xf32>
    %254 = tpu.matmul %252, %253, %cst_104 {dimension_numbers = #tpu.dot_dimension_numbers<[1], [0], [0], [1], [0, 0, 1, 1], [], []>} : vector<8x8xf32>, vector<8x8xf32>, vector<8x8xf32> -> vector<8x8xf32>
    %255 = vector.extract_strided_slice %201 {offsets = [0, 24], sizes = [8, 8], strides = [1, 1]} : vector<8x32xf32> to vector<8x8xf32>
    %256 = vector.extract_strided_slice %202 {offsets = [0, 24], sizes = [8, 8], strides = [1, 1]} : vector<8x32xf32> to vector<8x8xf32>
    %cst_105 = arith.constant dense<0.000000e+00> : vector<8x8xf32>
    %257 = tpu.matmul %255, %256, %cst_105 {dimension_numbers = #tpu.dot_dimension_numbers<[1], [1], [0], [0], [0, 0, 1, 0], [], []>} : vector<8x8xf32>, vector<8x8xf32>, vector<8x8xf32> -> vector<8x8xf32>
    %258 = vector.broadcast %7 : vector<1x8xf32> to vector<8x8xf32>
    %259 = arith.addf %257, %258 : vector<8x8xf32>
    %cst_106 = arith.constant dense<0xFF800000> : vector<8xf32>
    %260 = vector.multi_reduction <maximumf>, %259, %cst_106 [1] : vector<8x8xf32> to vector<8xf32>
    %261 = vector.shape_cast %260 : vector<8xf32> to vector<8x1xf32>
    %262 = vector.broadcast %261 : vector<8x1xf32> to vector<8x8xf32>
    %263 = arith.subf %259, %262 : vector<8x8xf32>
    %264 = math.exp %263 : vector<8x8xf32>
    %cst_107 = arith.constant dense<0.000000e+00> : vector<8xf32>
    %265 = vector.multi_reduction <add>, %264, %cst_107 [1] : vector<8x8xf32> to vector<8xf32>
    %266 = vector.shape_cast %265 : vector<8xf32> to vector<8x1xf32>
    %267 = tpu.reciprocal %266 {approx = true} : vector<8x1xf32> -> vector<8x1xf32>
    %268 = vector.broadcast %267 : vector<8x1xf32> to vector<8x8xf32>
    %269 = arith.mulf %264, %268 : vector<8x8xf32>
    %270 = vector.extract_strided_slice %203 {offsets = [0, 24], sizes = [8, 8], strides = [1, 1]} : vector<8x32xf32> to vector<8x8xf32>
    %cst_108 = arith.constant dense<0.000000e+00> : vector<8x8xf32>
    %271 = tpu.matmul %269, %270, %cst_108 {dimension_numbers = #tpu.dot_dimension_numbers<[1], [0], [0], [1], [0, 0, 1, 1], [], []>} : vector<8x8xf32>, vector<8x8xf32>, vector<8x8xf32> -> vector<8x8xf32>
    %272 = tpu.concatenate %220, %237, %254, %271 in 1 : vector<8x8xf32>, vector<8x8xf32>, vector<8x8xf32>, vector<8x8xf32> -> vector<8x32xf32>
    %c1_109 = arith.constant 1 : index
    %c0_110 = arith.constant 0 : index
    %c0_111 = arith.constant 0 : index
    %273 = vector.load %arg8[%c1_109, %c0_110, %c0_111] : memref<2x32x32xf32, #tpu.memory_space<vmem>>, vector<1x32x32xf32>
    %274 = vector.shape_cast %273 : vector<1x32x32xf32> to vector<32x32xf32>
    %cst_112 = arith.constant dense<0.000000e+00> : vector<8x32xf32>
    %275 = tpu.matmul %272, %274, %cst_112 {dimension_numbers = #tpu.dot_dimension_numbers<[1], [0], [0], [1], [0, 0, 1, 1], [], []>} : vector<8x32xf32>, vector<32x32xf32>, vector<8x32xf32> -> vector<8x32xf32>
    %276 = arith.addf %165, %275 : vector<8x32xf32>
    %c1_113 = arith.constant 1 : index
    %c0_114 = arith.constant 0 : index
    %c0_115 = arith.constant 0 : index
    %277 = vector.load %arg9[%c1_113, %c0_114, %c0_115] : memref<2x1x32xf32, #tpu.memory_space<vmem>>, vector<1x1x32xf32>
    %278 = vector.shape_cast %277 : vector<1x1x32xf32> to vector<1x32xf32>
    %279 = vector.broadcast %278 : vector<1x32xf32> to vector<8x32xf32>
    %280 = arith.addf %276, %279 : vector<8x32xf32>
    %c1_116 = arith.constant 1 : index
    %c0_117 = arith.constant 0 : index
    %c0_118 = arith.constant 0 : index
    %281 = vector.load %arg10[%c1_116, %c0_117, %c0_118] : memref<2x1x32xf32, #tpu.memory_space<vmem>>, vector<1x1x32xf32>
    %282 = vector.shape_cast %281 : vector<1x1x32xf32> to vector<1x32xf32>
    %c1_119 = arith.constant 1 : index
    %c0_120 = arith.constant 0 : index
    %c0_121 = arith.constant 0 : index
    %283 = vector.load %arg11[%c1_119, %c0_120, %c0_121] : memref<2x1x32xf32, #tpu.memory_space<vmem>>, vector<1x1x32xf32>
    %284 = vector.shape_cast %283 : vector<1x1x32xf32> to vector<1x32xf32>
    %cst_122 = arith.constant dense<0.000000e+00> : vector<8xf32>
    %285 = vector.multi_reduction <add>, %280, %cst_122 [1] : vector<8x32xf32> to vector<8xf32>
    %286 = vector.shape_cast %285 : vector<8xf32> to vector<8x1xf32>
    %cst_123 = arith.constant 3.200000e+01 : f32
    %287 = vector.broadcast %cst_123 : f32 to vector<8x1xf32>
    %288 = arith.divf %286, %287 : vector<8x1xf32>
    %289 = vector.broadcast %288 : vector<8x1xf32> to vector<8x32xf32>
    %290 = arith.subf %280, %289 : vector<8x32xf32>
    %291 = arith.mulf %290, %290 : vector<8x32xf32>
    %cst_124 = arith.constant dense<0.000000e+00> : vector<8xf32>
    %292 = vector.multi_reduction <add>, %291, %cst_124 [1] : vector<8x32xf32> to vector<8xf32>
    %293 = vector.shape_cast %292 : vector<8xf32> to vector<8x1xf32>
    %cst_125 = arith.constant 3.200000e+01 : f32
    %294 = vector.broadcast %cst_125 : f32 to vector<8x1xf32>
    %295 = arith.divf %293, %294 : vector<8x1xf32>
    %296 = vector.broadcast %288 : vector<8x1xf32> to vector<8x32xf32>
    %297 = arith.subf %280, %296 : vector<8x32xf32>
    %cst_126 = arith.constant 9.99999974E-6 : f32
    %298 = vector.broadcast %cst_126 : f32 to vector<8x1xf32>
    %299 = arith.addf %295, %298 : vector<8x1xf32>
    %300 = math.rsqrt %299 : vector<8x1xf32>
    %301 = vector.broadcast %300 : vector<8x1xf32> to vector<8x32xf32>
    %302 = arith.mulf %297, %301 : vector<8x32xf32>
    %303 = vector.broadcast %282 : vector<1x32xf32> to vector<8x32xf32>
    %304 = arith.mulf %302, %303 : vector<8x32xf32>
    %305 = vector.broadcast %284 : vector<1x32xf32> to vector<8x32xf32>
    %306 = arith.addf %304, %305 : vector<8x32xf32>
    %c1_127 = arith.constant 1 : index
    %c0_128 = arith.constant 0 : index
    %c0_129 = arith.constant 0 : index
    %307 = vector.load %arg12[%c1_127, %c0_128, %c0_129] : memref<2x32x64xf32, #tpu.memory_space<vmem>>, vector<1x32x64xf32>
    %308 = vector.shape_cast %307 : vector<1x32x64xf32> to vector<32x64xf32>
    %cst_130 = arith.constant dense<0.000000e+00> : vector<8x64xf32>
    %309 = tpu.matmul %306, %308, %cst_130 {dimension_numbers = #tpu.dot_dimension_numbers<[1], [0], [0], [1], [0, 0, 1, 1], [], []>} : vector<8x32xf32>, vector<32x64xf32>, vector<8x64xf32> -> vector<8x64xf32>
    %c1_131 = arith.constant 1 : index
    %c0_132 = arith.constant 0 : index
    %c0_133 = arith.constant 0 : index
    %310 = vector.load %arg13[%c1_131, %c0_132, %c0_133] : memref<2x1x64xf32, #tpu.memory_space<vmem>>, vector<1x1x64xf32>
    %311 = vector.shape_cast %310 : vector<1x1x64xf32> to vector<1x64xf32>
    %312 = vector.broadcast %311 : vector<1x64xf32> to vector<8x64xf32>
    %313 = arith.addf %309, %312 : vector<8x64xf32>
    %cst_134 = arith.constant 0.000000e+00 : f32
    %314 = vector.broadcast %cst_134 : f32 to vector<8x64xf32>
    %315 = arith.maximumf %313, %314 : vector<8x64xf32>
    %c1_135 = arith.constant 1 : index
    %c0_136 = arith.constant 0 : index
    %c0_137 = arith.constant 0 : index
    %316 = vector.load %arg14[%c1_135, %c0_136, %c0_137] : memref<2x64x32xf32, #tpu.memory_space<vmem>>, vector<1x64x32xf32>
    %317 = vector.shape_cast %316 : vector<1x64x32xf32> to vector<64x32xf32>
    %cst_138 = arith.constant dense<0.000000e+00> : vector<8x32xf32>
    %318 = tpu.matmul %315, %317, %cst_138 {dimension_numbers = #tpu.dot_dimension_numbers<[1], [0], [0], [1], [0, 0, 1, 1], [], []>} : vector<8x64xf32>, vector<64x32xf32>, vector<8x32xf32> -> vector<8x32xf32>
    %319 = arith.addf %280, %318 : vector<8x32xf32>
    %c1_139 = arith.constant 1 : index
    %c0_140 = arith.constant 0 : index
    %c0_141 = arith.constant 0 : index
    %320 = vector.load %arg15[%c1_139, %c0_140, %c0_141] : memref<2x1x32xf32, #tpu.memory_space<vmem>>, vector<1x1x32xf32>
    %321 = vector.shape_cast %320 : vector<1x1x32xf32> to vector<1x32xf32>
    %322 = vector.broadcast %321 : vector<1x32xf32> to vector<8x32xf32>
    %323 = arith.addf %319, %322 : vector<8x32xf32>
    %c0_142 = arith.constant 0 : index
    %c0_143 = arith.constant 0 : index
    %324 = vector.load %arg16[%c0_142, %c0_143] : memref<1x32xf32, #tpu.memory_space<vmem>>, vector<1x32xf32>
    %c0_144 = arith.constant 0 : index
    %c0_145 = arith.constant 0 : index
    %325 = vector.load %arg17[%c0_144, %c0_145] : memref<1x32xf32, #tpu.memory_space<vmem>>, vector<1x32xf32>
    %cst_146 = arith.constant dense<0.000000e+00> : vector<8xf32>
    %326 = vector.multi_reduction <add>, %323, %cst_146 [1] : vector<8x32xf32> to vector<8xf32>
    %327 = vector.shape_cast %326 : vector<8xf32> to vector<8x1xf32>
    %cst_147 = arith.constant 3.200000e+01 : f32
    %328 = vector.broadcast %cst_147 : f32 to vector<8x1xf32>
    %329 = arith.divf %327, %328 : vector<8x1xf32>
    %330 = vector.broadcast %329 : vector<8x1xf32> to vector<8x32xf32>
    %331 = arith.subf %323, %330 : vector<8x32xf32>
    %332 = arith.mulf %331, %331 : vector<8x32xf32>
    %cst_148 = arith.constant dense<0.000000e+00> : vector<8xf32>
    %333 = vector.multi_reduction <add>, %332, %cst_148 [1] : vector<8x32xf32> to vector<8xf32>
    %334 = vector.shape_cast %333 : vector<8xf32> to vector<8x1xf32>
    %cst_149 = arith.constant 3.200000e+01 : f32
    %335 = vector.broadcast %cst_149 : f32 to vector<8x1xf32>
    %336 = arith.divf %334, %335 : vector<8x1xf32>
    %337 = vector.broadcast %329 : vector<8x1xf32> to vector<8x32xf32>
    %338 = arith.subf %323, %337 : vector<8x32xf32>
    %cst_150 = arith.constant 9.99999997E-7 : f32
    %339 = vector.broadcast %cst_150 : f32 to vector<8x1xf32>
    %340 = arith.addf %336, %339 : vector<8x1xf32>
    %341 = math.rsqrt %340 : vector<8x1xf32>
    %342 = vector.broadcast %341 : vector<8x1xf32> to vector<8x32xf32>
    %343 = arith.mulf %338, %342 : vector<8x32xf32>
    %344 = vector.broadcast %324 : vector<1x32xf32> to vector<8x32xf32>
    %345 = arith.mulf %343, %344 : vector<8x32xf32>
    %346 = vector.broadcast %325 : vector<1x32xf32> to vector<8x32xf32>
    %347 = arith.addf %345, %346 : vector<8x32xf32>
    %c0_151 = arith.constant 0 : index
    %c0_152 = arith.constant 0 : index
    %c0_153 = arith.constant 0 : index
    %348 = vector.load %arg18[%c0_151, %c0_152, %c0_153] : memref<1x8x32xf32, #tpu.memory_space<vmem>>, vector<1x8x32xf32>
    %349 = vector.shape_cast %348 : vector<1x8x32xf32> to vector<8x32xf32>
    %350 = vector.shape_cast %347 : vector<8x32xf32> to vector<1x8x32xf32>
    tpu.vector_store %arg18[%c0_151, %c0_152, %c0_153], %350 {strides = array<i32>} : memref<1x8x32xf32, #tpu.memory_space<vmem>>, vector<1x8x32xf32>,
    return
  }
  func.func @transform_0(%arg0: i32) -> (i32, i32, i32) {
    %c0_i32 = arith.constant 0 : i32
    %c0_i32_0 = arith.constant 0 : i32
    %c0_i32_1 = arith.constant 0 : i32
    return %arg0, %c0_i32, %c0_i32_0 : i32, i32, i32
  }
  func.func @transform_1(%arg0: i32) -> (i32, i32, i32) {
    %c0_i32 = arith.constant 0 : i32
    %c0_i32_0 = arith.constant 0 : i32
    %c0_i32_1 = arith.constant 0 : i32
    return %arg0, %c0_i32, %c0_i32_0 : i32, i32, i32
  }
  func.func @transform_2(%arg0: i32) -> (i32, i32, i32) {
    %c0_i32 = arith.constant 0 : i32
    %c0_i32_0 = arith.constant 0 : i32
    %c0_i32_1 = arith.constant 0 : i32
    return %arg0, %c0_i32, %c0_i32_0 : i32, i32, i32
  }
  func.func @transform_3(%arg0: i32) -> (i32, i32, i32) {
    %c0_i32 = arith.constant 0 : i32
    %c0_i32_0 = arith.constant 0 : i32
    %c0_i32_1 = arith.constant 0 : i32
    %c0_i32_2 = arith.constant 0 : i32
    return %c0_i32, %c0_i32_0, %c0_i32_1 : i32, i32, i32
  }
  func.func @transform_4(%arg0: i32) -> (i32, i32, i32) {
    %c0_i32 = arith.constant 0 : i32
    %c0_i32_0 = arith.constant 0 : i32
    %c0_i32_1 = arith.constant 0 : i32
    %c0_i32_2 = arith.constant 0 : i32
    return %c0_i32, %c0_i32_0, %c0_i32_1 : i32, i32, i32
  }
  func.func @transform_5(%arg0: i32) -> (i32, i32, i32) {
    %c0_i32 = arith.constant 0 : i32
    %c0_i32_0 = arith.constant 0 : i32
    %c0_i32_1 = arith.constant 0 : i32
    %c0_i32_2 = arith.constant 0 : i32
    return %c0_i32, %c0_i32_0, %c0_i32_1 : i32, i32, i32
  }
  func.func @transform_6(%arg0: i32) -> (i32, i32, i32) {
    %c0_i32 = arith.constant 0 : i32
    %c0_i32_0 = arith.constant 0 : i32
    %c0_i32_1 = arith.constant 0 : i32
    %c0_i32_2 = arith.constant 0 : i32
    return %c0_i32, %c0_i32_0, %c0_i32_1 : i32, i32, i32
  }
  func.func @transform_7(%arg0: i32) -> (i32, i32, i32) {
    %c0_i32 = arith.constant 0 : i32
    %c0_i32_0 = arith.constant 0 : i32
    %c0_i32_1 = arith.constant 0 : i32
    %c0_i32_2 = arith.constant 0 : i32
    return %c0_i32, %c0_i32_0, %c0_i32_1 : i32, i32, i32
  }
  func.func @transform_8(%arg0: i32) -> (i32, i32, i32) {
    %c0_i32 = arith.constant 0 : i32
    %c0_i32_0 = arith.constant 0 : i32
    %c0_i32_1 = arith.constant 0 : i32
    %c0_i32_2 = arith.constant 0 : i32
    return %c0_i32, %c0_i32_0, %c0_i32_1 : i32, i32, i32
  }
  func.func @transform_9(%arg0: i32) -> (i32, i32, i32) {
    %c0_i32 = arith.constant 0 : i32
    %c0_i32_0 = arith.constant 0 : i32
    %c0_i32_1 = arith.constant 0 : i32
    %c0_i32_2 = arith.constant 0 : i32
    return %c0_i32, %c0_i32_0, %c0_i32_1 : i32, i32, i32
  }
  func.func @transform_10(%arg0: i32) -> (i32, i32, i32) {
    %c0_i32 = arith.constant 0 : i32
    %c0_i32_0 = arith.constant 0 : i32
    %c0_i32_1 = arith.constant 0 : i32
    %c0_i32_2 = arith.constant 0 : i32
    return %c0_i32, %c0_i32_0, %c0_i32_1 : i32, i32, i32
  }
  func.func @transform_11(%arg0: i32) -> (i32, i32, i32) {
    %c0_i32 = arith.constant 0 : i32
    %c0_i32_0 = arith.constant 0 : i32
    %c0_i32_1 = arith.constant 0 : i32
    %c0_i32_2 = arith.constant 0 : i32
    return %c0_i32, %c0_i32_0, %c0_i32_1 : i32, i32, i32
  }
  func.func @transform_12(%arg0: i32) -> (i32, i32, i32) {
    %c0_i32 = arith.constant 0 : i32
    %c0_i32_0 = arith.constant 0 : i32
    %c0_i32_1 = arith.constant 0 : i32
    %c0_i32_2 = arith.constant 0 : i32
    return %c0_i32, %c0_i32_0, %c0_i32_1 : i32, i32, i32
  }
  func.func @transform_13(%arg0: i32) -> (i32, i32, i32) {
    %c0_i32 = arith.constant 0 : i32
    %c0_i32_0 = arith.constant 0 : i32
    %c0_i32_1 = arith.constant 0 : i32
    %c0_i32_2 = arith.constant 0 : i32
    return %c0_i32, %c0_i32_0, %c0_i32_1 : i32, i32, i32
  }
  func.func @transform_14(%arg0: i32) -> (i32, i32, i32) {
    %c0_i32 = arith.constant 0 : i32
    %c0_i32_0 = arith.constant 0 : i32
    %c0_i32_1 = arith.constant 0 : i32
    %c0_i32_2 = arith.constant 0 : i32
    return %c0_i32, %c0_i32_0, %c0_i32_1 : i32, i32, i32
  }
  func.func @transform_15(%arg0: i32) -> (i32, i32) {
    %c0_i32 = arith.constant 0 : i32
    %c0_i32_0 = arith.constant 0 : i32
    %c0_i32_1 = arith.constant 0 : i32
    return %c0_i32, %c0_i32_0 : i32, i32
  }
  func.func @transform_16(%arg0: i32) -> (i32, i32) {
    %c0_i32 = arith.constant 0 : i32
    %c0_i32_0 = arith.constant 0 : i32
    %c0_i32_1 = arith.constant 0 : i32
    return %c0_i32, %c0_i32_0 : i32, i32
  }
  func.func @transform_17(%arg0: i32) -> (i32, i32, i32) {
    %c0_i32 = arith.constant 0 : i32
    %c0_i32_0 = arith.constant 0 : i32
    %c0_i32_1 = arith.constant 0 : i32
    return %arg0, %c0_i32, %c0_i32_0 : i32, i32, i32
  }
}

</mosaic_0001>

<bundles_post_ra>
// kernel: tpu_custom_call.1
= control target key start
LH: loop header
LB: loop body
LE: loop exit
PB: predicated region body
PF: predicated region fallthrough
CT: control target
= control target key end

     0   :  { %s4214_s0 = inlined_call_operand.hbm [shape: f32[2,8,32], index: 0, kind: input, shape index: {}]   ;;  %s4215_s1 = inlined_call_operand.vmem [shape: f32[2,1,32], index: 1, kind: input, shape index: {}]   ;;  %s4216_s2 = inlined_call_operand.vmem [shape: f32[2,1,8], index: 2, kind: input, shape index: {}]   ;;  %s4217_s3 = inlined_call_operand.vmem [shape: f32[2,1,32], index: 3, kind: input, shape index: {}]   ;;  %s4218_s4 = inlined_call_operand.vmem [shape: f32[2,1,32], index: 4, kind: input, shape index: {}]   ;;  %s4219_s5 = inlined_call_operand.vmem [shape: f32[2,32,96], index: 5, kind: input, shape index: {}]   ;;  %s4220_s6 = inlined_call_operand.vmem [shape: f32[2,1,96], index: 6, kind: input, shape index: {}]   ;;  %s4221_s7 = inlined_call_operand.vmem [shape: f32[2,32,32], index: 7, kind: input, shape index: {}]   ;;  %s4222_s8 = inlined_call_operand.vmem [shape: f32[2,1,32], index: 8, kind: input, shape index: {}]   ;;  %s4223_s9 = inlined_call_operand.vmem [shape: f32[2,1,32], index: 9, kind: input, shape index: {}]   ;;  %s4224_s10 = inlined_call_operand.vmem [shape: f32[2,1,32], index: 10, kind: input, shape index: {}]   ;;  %s4225_s11 = inlined_call_operand.vmem [shape: f32[2,32,64], index: 11, kind: input, shape index: {}]   ;;  %s4226_s12 = inlined_call_operand.vmem [shape: f32[2,1,64], index: 12, kind: input, shape index: {}]   ;;  %s4227_s13 = inlined_call_operand.vmem [shape: f32[2,64,32], index: 13, kind: input, shape index: {}]   ;;  %s4228_s14 = inlined_call_operand.vmem [shape: f32[2,1,32], index: 14, kind: input, shape index: {}]   ;;  %s4229_s15 = inlined_call_operand.vmem [shape: f32[1,32], index: 15, kind: input, shape index: {}]   ;;  %s4230_s16 = inlined_call_operand.vmem [shape: f32[1,32], index: 16, kind: input, shape index: {}]   ;;  %s4231_s17 = inlined_call_operand.hbm [shape: f32[2,8,32], index: 17, kind: output, shape index: {}]  }
   0x1   :  { %4253 = sst [smem:[#allocation12_spill]] %s4214_s0 }
   0x2   :  { %4254 = sst [smem:[#allocation13_spill]] %s4215_s1 }
   0x3   :  { %4255 = sst [smem:[#allocation14_spill]] %s4216_s2 }
   0x4   :  { %4256 = sst [smem:[#allocation15_spill]] %s4217_s3 }
   0x5   :  { %4257 = sst [smem:[#allocation16_spill]] %s4218_s4 }
   0x6   :  { %4258 = sst [smem:[#allocation17_spill]] %s4219_s5 }
   0x7   :  { %4259 = sst [smem:[#allocation18_spill]] %s4229_s15 }
   0x8   :  { %4260 = sst [smem:[#allocation19_spill]] %s4230_s16 }
   0x9   :  { %4261 = sst [smem:[#allocation20_spill]] %s4231_s17 }
   0xa   :  { %22 = vsyncpa [#allocation3], 0 }
   0xb   :  { %24 = vsyncpa [#allocation3 + $0x1], 0 }
   0xc   :  { %25 = vsyncpa [#allocation4], 0 }
   0xd   :  { %27 = vsyncpa [#allocation4 + $0x1], 0  ;;  %s3644_s24 = smov 0   ;;  %s3646_s25 = smov 0  }
   0xe   :  { %s3648_s26 = smov 0   ;;  %s3650_s27 = smov 0  }
   0xf LB: > { %4262 = sst [smem:[#allocation8_spill]] %s3521_s24  ;;  %s3665_s28 = sadd.s32 4294967295, %s3533_s27   ;;  %s3533_s27 = sphi %s3650_s27, %s4301_s27   ;;  %s3529_s26 = sphi %s3648_s26, %s4305_s26   ;;  %s3525_s25 = sphi %s3646_s25, %s4304_s25   ;;  %s3521_s24 = sphi %s3644_s24, %s4303_s24  }
  0x10   : > { %s2916_s29 = sadd.s32 4294967294, %s3533_s27   ;;  %s3669_s0 = sadd.s32 1, %s3533_s27  }
  0x11   : > { %4263 = sst [smem:[#allocation9_spill]] %s3669_s0  ;;  %s40_s30 = sadd.s32 1, %s3529_s26 }
  0x12   : > { %s37_s18 = ssub.s32 %s3533_s27, %s3669_s0  ;;  %p47_p0 = scmp.ne.s32.totalorder %s3529_s26, %s3525_s25 }
  0x13   : > { %p38_p1 = scmp.eq.s32.totalorder %s37_s18, 0  ;;  %p48_p2 = scmp.eq.s32.totalorder %s3533_s27, 0 }
  0x14   : > { %p53_p3 = scmp.ne.s32.totalorder %s3525_s25, %s3521_s24  ;;  %p54_p4 = scmp.eq.s32.totalorder %s3665_s28, 0 }
  0x15   : > { %s3681_s19 = scalar_select %p38_p1, %s3529_s26, %s40_s30  }
  0x16   : > { %p3683_p5 = por %p48_p2, %p47_p0  ;;  %p3687_p6 = por %p54_p4, %p53_p3 }
  0x17   : > { %4264 = sst [smem:[#allocation10_spill]] %s3681_s19  ;;  %p423_p7 = scmp.eq.s32.totalorder %s3665_s28, 1 }
  0x18   : > { %p429_p8 = scmp.eq.s32.totalorder %s2916_s29, 1  ;;  %p3344_p10 = scmp.lt.s32.totalorder %s3533_s27, 2 }
  0x19   : > { %p3694_p11 = por %p423_p7, %p47_p0  ;;  %s491_s23 = sand.u32 1, %s3529_s26  }
  0x1a   : > { %p3698_p12 = por %p429_p8, %p53_p3  ;;  %s2920_s30 = sshll.u32 %s3533_s27, 7 }
  0x1b   : > { %s4267_s21 = scalar_select %p3694_p11, 1, 0 }
  0x1c   : > { %s4269_s22 = scalar_select %p3698_p12, 1, 0 }
  0x1d   : > { %4268 = sst [smem:[#allocation11_spill]] %s4267_s21  ;;  %s2919_s18 = sshll.u32 %s491_s23, 3 }
  0x1e   : > { %s4270_s24 = sld [smem:[#allocation12_spill]]  ;;  %s495_s29 = scalar_lea.vmem [#allocation2], %s2919_s18 }
  0x1f   : > { %s502_s15 = sshll.u32 %s495_s29, 4  ;;  %p3711_p13 = pnand %p3344_p10, %p3683_p5  ;;  %s3715_s15 = int_to_ptr.vmem [resolvable:$true] %s502_s15 }
  0x20   : > { %s492_s0 = scalar_lea.sflag [#allocation3], %s491_s23 }
  0x21   : > { %p3439_p3 = pneg %p3711_p13 }
  0x24   : > { %s4271_s17 = smov %s4270_s24  ;;  %s3707_s16 = scalar_lea.hbm %s4270_s24, %s2920_s30 }
  0x25   : > { %s3437_s24 = scalar_lea.hbm %s3707_s16, 128  ;;  %s3442_s30 = scalar_lea.hbm %s4271_s17, 256 }
  0x26   : > { %p3438_p2 = scmp.ne.s32.totalorder %s3707_s16, %s3437_s24  ;;  %p3443_p5 = scmp.lt.u32.totalorder %s3707_s16, %s4271_s17 }
  0x27   : > { %p3444_p8 = scmp.lt.u32.totalorder %s3442_s30, %s3437_s24  ;;  %p3446_p9 = scmp.lt.u32.totalorder %s3437_s24, %s3707_s16 }
  0x28   : > { %p3440_p4 = pnand %p3439_p3, %p3438_p2 }
  0x29   : > { %p3445_p10 = por %p3444_p8, %p3443_p5 }
  0x2a   : > { %p3441_p7 = pneg %p3440_p4 }
  0x2b   : > { %p3447_p0 = por %p3446_p9, %p3445_p10 }
  0x2d   : > { %p3448_p1 = pnand %p3447_p0, %p3441_p7 }
  0x2f   : > { %3451 = shalt.err (!%p3448_p1)
}
  0x30   : > { %s3452_s23 = scalar_lea.vmem %s3715_s15, 128  ;;  %s3535_s19 = smov [#allocation2]  }
  0x31   : > { %p3453_p2 = scmp.ne.s32.totalorder %s3715_s15, %s3452_s23  ;;  %s3457_s1 = sshll.u32 %s3535_s19, 4  ;;  %s3458_s1 = int_to_ptr.vmem [resolvable:$false] %s3457_s1 }
  0x32   : > { %s3459_s18 = scalar_lea.vmem %s3458_s1, 256  ;;  %p3460_p11 = scmp.lt.s32.totalorder %s3715_s15, %s3458_s1 }
  0x33   : > { %p3455_p4 = pnand %p3453_p2, %p3439_p3  ;;  %p3461_p5 = scmp.lt.s32.totalorder %s3459_s18, %s3452_s23 }
  0x35   : > { %p3456_p12 = pneg %p3455_p4  ;;  %p3462_p8 = por %p3461_p5, %p3460_p11 }
  0x37   : > { %p3463_p9 = pnand %p3462_p8, %p3456_p12 }
  0x39   : > { %3466 = shalt.err (!%p3463_p9)
}
  0x3a   : > { %3339 = dma.hbm_to_vmem [thread:$0]  (!%p3711_p13), %s3707_s16, 128, %s3715_s15, %s492_s0  }
  0x3b   : > { %p4273_p0 = scmp.lt.s32.totalorder %s3533_s27, 3  ;;  %p4274_p1 = scmp.ge.s32.totalorder %s3533_s27, 1 }
  0x3d   : > { %p520_p3 = pnand %p4274_p1, %p4273_p0 }
  0x3e   : > { %s3749_s24 = sand.u32 (!%p520_p3), 1, %s3525_s25  }
  0x3f   : > { %523 = sbr.rel (%p520_p3) target bundleno = 5361 (0x14f1), region = 88  ;;  %s4240_s30 = sshll.u32 (!%p520_p3), %s3749_s24, 3 }
  0x40   : > { %s526_s29 = scalar_lea.sflag (!%p520_p3), [#allocation3], %s3749_s24  ;;  %s529_s21 = scalar_lea.vmem (!%p520_p3), [#allocation2], %s4240_s30 }
  0x46   : > { %3512 = dma.done.wait (%p3687_p6), %s526_s29, 128  }
  0x47   : > { %3514 = vsyncadd (%p3687_p6), %s526_s29, 4294967168  ;;  %p586_p11 = scmp.lt.s32.totalorder %s3665_s28, 1  ;;  %s4275_s23 = sld [smem:[#allocation13_spill]]  ;;  %v592_v0 = vld [vmem:[%s529_s21] sm:$0xff]  ;;  %vm604_vm0 = vcmask 261120   ;;  %v3536_v12 = vmov 0.0|0.0  }
  0x48   : > { %s4276_s5 = sld [smem:[#allocation17_spill]]  ;;  %3272 = vmatprep.subr.bf16.mxu1 %v3536_v12  ;;  %vm3537_vm1 = vmmov 0   ;;  %v3538_v15 = vmov 0.0   ;;  %s4277_s3 = sld [smem:[#allocation15_spill]]  ;;  %v2927_v26 = vld [vmem:[%s4220_s6] ss:$0 sm:$0xff] }
  0x49   : > { %s3761_s15 = scalar_select %p586_p11, %s3665_s28, 1  ;;  %3096 = vmatprep.mubr.msk.f32.mxu1 %vm3537_vm1, %v3538_v15  ;;  %3109 = vmatprep.subr.mxu0 %v3538_v15  ;;  %vm727_vm2 = vcmask 64512   ;;  %vm1398_vm3 = vcmask 130048   ;;  %vm1400_vm4 = vcmask 195584   ;;  %vm1610_vm5 = vcmask 523264  }
  0x4a   : > { %3111 = vmatprep.mubr.msk.f32.mxu0 %vm3537_vm1, %v3538_v15  ;;  %s4278_s4 = sld [smem:[#allocation16_spill]]  ;;  %s3539_s16 = smov 96  }
  0x4b   : > { %s4248_s0 = smov 120   ;;  %s4247_s20 = smov 72  }
  0x4c   : > { %s4246_s1 = smov 112   ;;  %s4245_s18 = smov 104  }
  0x4d   : > { %s588_s19 = scalar_lea.vmem %s4275_s23, %s3761_s15  ;;  %s3541_s23 = smov 88  }
  0x4e   : > { %v2924_v1 = vld [vmem:[%s588_s19] ss:$0 sm:$0xff]  ;;  %v634_v10 = vld [vmem:[%s4276_s5 + $0x8] sm:$0xff]  ;;  %v635_v11 = vld [vmem:[%s4276_s5 + $0x10] sm:$0xff]  ;;  %s4252_s19 = smov 80   ;;  %s4279_s2 = sld [smem:[#allocation14_spill]] }
  0x4f   : > { %v3767_v2 = vadd.f32 %v2924_v1, %v592_v0  ;;  %v633_v9 = vld [vmem:[%s4276_s5] sm:$0xff]  ;;  %v636_v14 = vld [vmem:[%s4276_s5 + $0x18] sm:$0xff]  ;;  %s4242_s29 = smov 40   ;;  %s4241_s21 = smov 56  }
  0x50   : > { %v3273_v13 = vpack.c.bf16 %v634_v10, %v633_v9  ;;  %v3276_v16 = vpack.c.bf16 %v636_v14, %v635_v11  ;;  %v2925_v21 = vld [vmem:[%s4277_s3] ss:$0 sm:$0xff] }
  0x51   : > { %v605_v3 = vsel %vm604_vm0, %v3767_v2, 0.0  ;;  %v2926_v23 = vld [vmem:[%s4278_s4] ss:$0 sm:$0xff] }
  0x52   : > { %606 = vadd.xlane.f32.xlu0 %v605_v3  ;;  %3274 = vmatpush3.bf16.msra.mxu1 %v3273_v13 }
  0x53   : > { %3275 = vmatprep.subr.bf16.mxu1 %v3536_v12 }
  0x54   : > { %s591_s30 = scalar_lea.vmem %s4279_s2, %s3761_s15  ;;  %s4243_s15 = smov 48  }
  0x55   : > { %v3843_v38 = vld [vmem:[%s591_s30] ss:$0 sm:$0xff]  ;;  %s4244_s30 = smov 64  }
  0x56   : > { %3277 = vmatpush3.bf16.msra.mxu1 %v3276_v16 }
  0x57   : > { %3099 = vmatprep.subr.mxu1 %v3538_v15 }
  0xdf   : > { %v607_v4 = vpop.xlane.xlu0 %606 }
  0xe0   : > { %v609_v5 = vmul.f32 0.03125, %v607_v4 }
  0xe2   : > { %v610_v6 = vsub.f32 %v3767_v2, %v609_v5 }
  0xe4   : > { %v611_v7 = vmul.f32 %v610_v6, %v610_v6 }
  0xe6   : > { %v612_v8 = vsel %vm604_vm0, %v611_v7, 0.0 }
  0xe7   : > { %613 = vadd.xlane.f32.xlu0 %v612_v8 }
 0x174   : > { %v614_v17 = vpop.xlane.xlu0 %613 }
 0x175   : > { %v615_v18 = vmul.f32 0.03125, %v614_v17 }
 0x177   : > { %v616_v19 = vadd.f32 1e-05, %v615_v18 }
 0x179   : > { %3395 = vrsqrt.f32 %v616_v19 }
 0x183   : > { %v3396_v20 = vpop.eup %3395 }
 0x184   : > { %v618_v22 = vmul.f32 %v3396_v20, %v610_v6 }
 0x186   : > { %v625_v24 = vmul.f32 %v2925_v21, %v618_v22 }
 0x188   : > { %v632_v25 = vadd.f32 %v2926_v23, %v625_v24 }
 0x18a   : > { %3097 = vmatmul.mubr.msk.f32.vlgmr.msra.gmra.mrb[0].mxu1 %vm604_vm0, %v632_v25 }
 0x18b   : > { %3101 = vmatprep.mubr.msk.f32.mxu1 %vm3537_vm1, %v3538_v15 }
 0x25d   : > { %v713_v27 = vpop.f32.mrb[0].mxu1 }
 0x25e   : > { %v3805_v28 = vadd.f32 %v2927_v26, %v713_v27  ;;  %v3098_v29 = vpop.f32.mrb[1].mxu1 }
 0x260   : > { %725 = vrot.lane.b32.xlu1 %v3805_v28, %s3539_s16  ;;  %v717_v30 = vmul.f32 0.35355338, %v3805_v28 }
 0x262   : > { %890 = vrot.lane.b32.xlu0 %v717_v30, %s4248_s0  ;;  %s4281_s0 = smov 120  }
 0x264   : > { %892 = vrot.lane.b32.xlu1 %v3805_v28, %s3541_s23 }
 0x268   : > { %1057 = vrot.lane.b32.xlu1 %v3805_v28, %s4252_s19  ;;  %s4283_s19 = smov 112  }
 0x26c   : > { %1222 = vrot.lane.b32.xlu1 %v3805_v28, %s4247_s20  ;;  %s4284_s20 = smov 104  }
 0x270   : > { %1055 = vrot.lane.b32.xlu1 %v717_v30, %s4246_s1  ;;  %s4249_s1 = smov 24  }
 0x274   : > { %1220 = vrot.lane.b32.xlu1 %v717_v30, %s4245_s18 }
 0x2d2   : > { %v726_v31 = vpop.permute.xlu1 %725 }
 0x2d3   : > { %3100 = vmatpush3.xpose.msk.msra.mxu1 %vm727_vm2, %v726_v31  ;;  %v1403_v31 = vld [vmem:[%s4221_s7 + $0x8] sm:$0xff] }
 0x2d4   : > { %3104 = vmatprep.subr.mxu1 %v3538_v15  ;;  %v891_v33 = vpop.permute.xlu0 %890 }
 0x2d6   : > { %v893_v32 = vpop.permute.xlu1 %892  ;;  %3102 = vmatmul.mubr.msk.f32.vlgmr.msra.gmra.mrb[2].mxu1 %vm727_vm2, %v717_v30  ;;  %v1402_v30 = vld [vmem:[%s4221_s7] sm:$0xff] }
 0x2d7   : > { %3110 = vmatpush3.xpose.msk.msra.mxu0 %vm727_vm2, %v893_v32  ;;  %3106 = vmatprep.mubr.msk.f32.mxu1 %vm3537_vm1, %v3538_v15  ;;  %v3279_v32 = vpack.c.bf16 %v1403_v31, %v1402_v30 }
 0x2d8   : > { %3119 = vmatprep.subr.mxu0 %v3538_v15 }
 0x2da   : > { %v1058_v34 = vpop.permute.xlu1 %1057  ;;  %3112 = vmatmul.mubr.msk.f32.vlgmr.msra.gmra.mrb[0].mxu0 %vm727_vm2, %v891_v33 }
 0x2db   : > { %3120 = vmatpush3.xpose.msk.msra.mxu0 %vm727_vm2, %v1058_v34  ;;  %3121 = vmatprep.mubr.msk.f32.mxu0 %vm3537_vm1, %v3538_v15 }
 0x2dc   : > { %3129 = vmatprep.subr.mxu0 %v3538_v15 }
 0x2de   : > { %v1223_v35 = vpop.permute.xlu1 %1222 }
 0x2e2   : > { %v1056_v36 = vpop.permute.xlu1 %1055 }
 0x2e3   : > { %3122 = vmatmul.mubr.msk.f32.vlgmr.msra.gmra.mrb[2].mxu0 %vm727_vm2, %v1056_v36  ;;  %v1405_v36 = vld [vmem:[%s4221_s7 + $0x18] sm:$0xff] }
 0x2e4   : > { %3130 = vmatpush3.xpose.msk.msra.mxu0 %vm727_vm2, %v1223_v35  ;;  %3131 = vmatprep.mubr.msk.f32.mxu0 %vm3537_vm1, %v3538_v15  ;;  %v1404_v35 = vld [vmem:[%s4221_s7 + $0x10] sm:$0xff] }
 0x2e5   : > { %3278 = vmatprep.subr.bf16.mxu0 %v3536_v12 }
 0x2e6   : > { %v1221_v37 = vpop.permute.xlu1 %1220 }
 0x2e7   : > { %3132 = vmatmul.mubr.msk.f32.vlgmr.msra.gmra.mrb[4].mxu0 %vm727_vm2, %v1221_v37  ;;  %v3282_v37 = vpack.c.bf16 %v1405_v36, %v1404_v35 }
 0x2e8   : > { %3147 = vmatprep.mubr.msk.f32.mxu0 %vm3537_vm1, %v3538_v15  ;;  %3280 = vmatpush3.bf16.msra.mxu0 %v3279_v32 }
 0x2e9   : > { %3281 = vmatprep.subr.bf16.mxu0 %v3536_v12 }
 0x2ec   : > { %3283 = vmatpush3.bf16.msra.mxu0 %v3282_v37 }
 0x2ed   : > { %3290 = vmatprep.subr.bf16.mxu0 %v3536_v12 }
 0x3a9   : > { %v799_v39 = vpop.f32.mrb[2].mxu1 }
 0x3aa   : > { %v800_v40 = vadd.f32 %v3843_v38, %v799_v39  ;;  %v3103_v41 = vpop.f32.mrb[3].mxu1 }
 0x3ac   : > { %v803_v42 = vsel %vm727_vm2, %v800_v40, -inf }
 0x3ad   : > { %v964_v43 = vpop.f32.mrb[0].mxu0  ;;  %804 = vmax.xlane.f32.xlu1 %v803_v42 }
 0x3ae   : > { %v965_v44 = vadd.f32 %v3843_v38, %v964_v43  ;;  %v3113_v45 = vpop.f32.mrb[1].mxu0 }
 0x3b0   : > { %v968_v46 = vsel %vm727_vm2, %v965_v44, -inf }
 0x3b1   : > { %969 = vmax.xlane.f32.xlu0 %v968_v46 }
 0x3b6   : > { %v1129_v47 = vpop.f32.mrb[2].mxu0 }
 0x3b7   : > { %v1130_v48 = vadd.f32 %v3843_v38, %v1129_v47  ;;  %v3123_v49 = vpop.f32.mrb[3].mxu0 }
 0x3b9   : > { %v1133_v50 = vsel %vm727_vm2, %v1130_v48, -inf }
 0x3ba   : > { %v1294_v51 = vpop.f32.mrb[4].mxu0  ;;  %1134 = vmax.xlane.f32.xlu1 %v1133_v50 }
 0x3bb   : > { %v1295_v52 = vadd.f32 %v3843_v38, %v1294_v51  ;;  %v3133_v53 = vpop.f32.mrb[5].mxu0 }
 0x3bd   : > { %v1298_v54 = vsel %vm727_vm2, %v1295_v52, -inf }
 0x3be   : > { %1299 = vmax.xlane.f32.xlu0 %v1298_v54 }
 0x3cb   : > { %814 = vrot.lane.b32.xlu1 %v3805_v28, %s4244_s30  ;;  %s4251_s30 = smov 8  }
 0x43a   : > { %v805_v55 = vpop.xlane.xlu1 %804 }
 0x43b   : > { %v806_v56 = vsub.f32 %v800_v40, %v805_v55 }
 0x43d   : > { %v807_v57 = vmul.f32 1.442695, %v806_v56 }
 0x43e   : > { %v970_v58 = vpop.xlane.xlu0 %969 }
 0x43f   : > { %3397 = vpow2.f32 %v807_v57  ;;  %v971_v59 = vsub.f32 %v965_v44, %v970_v58 }
 0x441   : > { %v972_v60 = vmul.f32 1.442695, %v971_v59 }
 0x443   : > { %3399 = vpow2.f32 %v972_v60 }
 0x447   : > { %v1135_v61 = vpop.xlane.xlu1 %1134 }
 0x448   : > { %v1136_v62 = vsub.f32 %v1130_v48, %v1135_v61 }
 0x449   : > { %v3398_v63 = vpop.eup %3397 }
 0x44a   : > { %v1137_v0 = vmul.f32 1.442695, %v1136_v62  ;;  %v809_v1 = vsel %vm727_vm2, %v3398_v63, 0.0  ;;  %v1517_v62 = vld [vmem:[%s4225_s11] sm:$0xff] }
 0x44b   : > { %v1300_v3 = vpop.xlane.xlu0 %1299  ;;  %810 = vadd.xlane.f32.xlu1 %v809_v1  ;;  %v815_v4 = vpop.permute.xlu1 %814  ;;  %v1520_v1 = vld [vmem:[%s4225_s11 + $0x18] sm:$0xff] }
 0x44c   : > { %3401 = vpow2.f32 %v1137_v0  ;;  %v1301_v5 = vsub.f32 %v1295_v52, %v1300_v3  ;;  %3105 = vmatpush3.msra.mxu1 %v815_v4  ;;  %v2943_v52 = vld [vmem:[%s4222_s8] ss:$0 sm:$0xff]  ;;  %v1519_v0 = vld [vmem:[%s4225_s11 + $0x10] sm:$0xff] }
 0x44d   : > { %v3400_v6 = vpop.eup %3399  ;;  %3114 = vmatprep.subr.mxu1 %v3538_v15  ;;  %v3288_v3 = vpack.c.bf16 %v1520_v1, %v1519_v0  ;;  %v1602_v4 = vld [vmem:[%s4227_s13] sm:$0xff] }
 0x44e   : > { %v1302_v7 = vmul.f32 1.442695, %v1301_v5  ;;  %v974_v8 = vsel %vm727_vm2, %v3400_v6, 0.0  ;;  %v1603_v5 = vld [vmem:[%s4227_s13 + $0x8] sm:$0xff] }
 0x44f   : > { %975 = vadd.xlane.f32.xlu0 %v974_v8  ;;  %v1605_v8 = vld [vmem:[%s4227_s13 + $0x18] sm:$0xff] }
 0x450   : > { %3403 = vpow2.f32 %v1302_v7  ;;  %v3291_v7 = vpack.c.bf16 %v1603_v5, %v1602_v4 }
 0x456   : > { %v3402_v9 = vpop.eup %3401 }
 0x457   : > { %v1139_v10 = vsel %vm727_vm2, %v3402_v9, 0.0 }
 0x458   : > { %1140 = vadd.xlane.f32.xlu1 %v1139_v10  ;;  %v1606_v10 = vld [vmem:[%s4227_s13 + $0x20] sm:$0xff] }
 0x45a   : > { %v3404_v11 = vpop.eup %3403 }
 0x45b   : > { %v1304_v13 = vsel %vm727_vm2, %v3404_v11, 0.0 }
 0x45c   : > { %1305 = vadd.xlane.f32.xlu0 %v1304_v13 }
 0x469   : > { %1144 = vrot.lane.b32.xlu1 %v3805_v28, %s4243_s15  ;;  %s4250_s15 = smov 16  }
 0x46d   : > { %1309 = vrot.lane.b32.xlu1 %v3805_v28, %s4242_s29  ;;  %s4292_s29 = sld [smem:[#allocation11_spill]] }
 0x472   : > { %979 = vrot.lane.b32.xlu0 %v3805_v28, %s4241_s21  ;;  %s4280_s21 = smov 80  }
 0x473   : > { %p4297_p12 = scmp.ne.s32.totalorder %s4292_s29, 0 }
 0x4d8   : > { %v811_v14 = vpop.xlane.xlu1 %810 }
 0x4d9   : > { %3405 = vrcp.f32 %v811_v14 }
 0x4dc   : > { %v976_v16 = vpop.xlane.xlu0 %975 }
 0x4dd   : > { %3407 = vrcp.f32 %v976_v16 }
 0x4e3   : > { %v3406_v17 = vpop.eup %3405 }
 0x4e4   : > { %v813_v18 = vmul.f32 %v3406_v17, %v3398_v63 }
 0x4e5   : > { %v1141_v19 = vpop.xlane.xlu1 %1140 }
 0x4e6   : > { %3409 = vrcp.f32 %v1141_v19  ;;  %3107 = vmatmul.mubr.msk.f32.vlgmr.msra.gmra.mrb[4].mxu1 %vm727_vm2, %v813_v18  ;;  %v2944_v19 = vld [vmem:[%s4223_s9] ss:$0 sm:$0xff] }
 0x4e7   : > { %3116 = vmatprep.mubr.msk.f32.mxu1 %vm3537_vm1, %v3538_v15  ;;  %v3408_v21 = vpop.eup %3407 }
 0x4e8   : > { %v978_v22 = vmul.f32 %v3408_v21, %v3400_v6  ;;  %v1604_v6 = vld [vmem:[%s4227_s13 + $0x10] sm:$0xff]  ;;  %v2945_v21 = vld [vmem:[%s4224_s10] ss:$0 sm:$0xff] }
 0x4e9   : > { %v1306_v20 = vpop.xlane.xlu0 %1305  ;;  %v1145_v23 = vpop.permute.xlu1 %1144 }
 0x4ea   : > { %3411 = vrcp.f32 %v1306_v20 }
 0x4ed   : > { %v980_v24 = vpop.permute.xlu0 %979  ;;  %v1310_v27 = vpop.permute.xlu1 %1309 }
 0x4ee   : > { %3115 = vmatpush3.msra.mxu1 %v980_v24  ;;  %v1608_v24 = vld [vmem:[%s4227_s13 + $0x30] sm:$0xff] }
 0x4ef   : > { %3117 = vmatmul.mubr.msk.f32.vlgmr.msra.gmra.mrb[6].mxu1 %vm727_vm2, %v978_v22  ;;  %3124 = vmatprep.subr.mxu1 %v3538_v15 }
 0x4f0   : > { %v3410_v25 = vpop.eup %3409  ;;  %3125 = vmatpush3.msra.mxu1 %v1145_v23  ;;  %3126 = vmatprep.mubr.msk.f32.mxu1 %vm3537_vm1, %v3538_v15 }
 0x4f1   : > { %v1143_v26 = vmul.f32 %v3410_v25, %v3402_v9  ;;  %3134 = vmatprep.subr.mxu1 %v3538_v15  ;;  %v3294_v9 = vpack.c.bf16 %v1605_v8, %v1604_v6  ;;  %v1609_v25 = vld [vmem:[%s4227_s13 + $0x38] sm:$0xff] }
 0x4f3   : > { %3127 = vmatmul.mubr.msk.f32.vlgmr.msra.gmra.mrb[8].mxu1 %vm727_vm2, %v1143_v26  ;;  %v3300_v26 = vpack.c.bf16 %v1609_v25, %v1608_v24 }
 0x4f4   : > { %v3412_v28 = vpop.eup %3411  ;;  %3135 = vmatpush3.msra.mxu1 %v1310_v27  ;;  %3136 = vmatprep.mubr.msk.f32.mxu1 %vm3537_vm1, %v3538_v15  ;;  %v2946_v27 = vld [vmem:[%s4226_s12] ss:$0 sm:$0xff] }
 0x4f5   : > { %v1308_v29 = vmul.f32 %v3412_v28, %v3404_v11  ;;  %3284 = vmatprep.subr.bf16.mxu1 %v3536_v12  ;;  %v1607_v11 = vld [vmem:[%s4227_s13 + $0x28] sm:$0xff] }
 0x4f6   : > { %v3297_v13 = vpack.c.bf16 %v1607_v11, %v1606_v10 }
 0x4f7   : > { %3137 = vmatmul.mubr.msk.f32.vlgmr.msra.gmra.mrb[10].mxu1 %vm727_vm2, %v1308_v29 }
 0x4f8   : > { %3158 = vmatprep.mubr.msk.f32.mxu1 %vm3537_vm1, %v3538_v15 }
 0x5b9   : > { %v886_v33 = vpop.f32.mrb[4].mxu1 }
 0x5ba   : > { %v3108_v34 = vpop.f32.mrb[5].mxu1 }
 0x5c2   : > { %v1051_v39 = vpop.f32.mrb[6].mxu1 }
 0x5c3   : > { %1386 = vrot.lane.b32.xlu0 %v1051_v39, %s4251_s30  ;;  %v3118_v40 = vpop.f32.mrb[7].mxu1  ;;  %s4287_s30 = smov 40  }
 0x5c6   : > { %v1216_v41 = vpop.f32.mrb[8].mxu1 }
 0x5c7   : > { %1390 = vrot.lane.b32.xlu1 %v1216_v41, %s4250_s15  ;;  %v3128_v42 = vpop.f32.mrb[9].mxu1  ;;  %s4288_s15 = smov 56  }
 0x5ca   : > { %v1381_v43 = vpop.f32.mrb[10].mxu1 }
 0x5cb   : > { %1394 = vrot.lane.b32.xlu0 %v1381_v43, %s4249_s1  ;;  %v3138_v44 = vpop.f32.mrb[11].mxu1  ;;  %s4282_s1 = smov 72  }
 0x5cc   : > { %v2954_v44 = vld [vmem:[%s4276_s5 + $0x20] sm:$0xff] }
 0x635   : > { %v1387_v45 = vpop.permute.xlu0 %1386 }
 0x636   : > { %v1397_v47 = vsel %vm727_vm2, %v886_v33, %v1387_v45  ;;  %v2949_v33 = vld [vmem:[%s4228_s14] ss:$0 sm:$0xff]  ;;  %v2955_v45 = vld [vmem:[%s4276_s5 + $0x28] sm:$0xff] }
 0x639   : > { %v1391_v46 = vpop.permute.xlu1 %1390 }
 0x63a   : > { %v1399_v48 = vsel %vm1398_vm3, %v1397_v47, %v1391_v46  ;;  %v3303_v46 = vpack.c.bf16 %v2955_v45, %v2954_v44  ;;  %v2956_v47 = vld [vmem:[%s4276_s5 + $0x30] sm:$0xff] }
 0x63d   : > { %v1395_v49 = vpop.permute.xlu0 %1394 }
 0x63e   : > { %v1401_v50 = vsel %vm1400_vm4, %v1399_v48, %v1395_v49  ;;  %v2957_v48 = vld [vmem:[%s4276_s5 + $0x38] sm:$0xff] }
 0x63f   : > { %3148 = vmatmul.mubr.msk.f32.vlgmr.msra.gmra.mrb[6].mxu0 %vm604_vm0, %v1401_v50  ;;  %v3306_v49 = vpack.c.bf16 %v2957_v48, %v2956_v47 }
 0x640   : > { %3177 = vmatprep.mubr.msk.f32.mxu0 %vm3537_vm1, %v3538_v15  ;;  %3292 = vmatpush3.bf16.msra.mxu0 %v3291_v7 }
 0x641   : > { %3293 = vmatprep.subr.bf16.mxu0 %v3536_v12 }
 0x644   : > { %3295 = vmatpush3.bf16.msra.mxu0 %v3294_v9 }
 0x645   : > { %3296 = vmatprep.subr.bf16.mxu0 %v3536_v12 }
 0x648   : > { %3298 = vmatpush3.bf16.msra.mxu0 %v3297_v13 }
 0x649   : > { %3299 = vmatprep.subr.bf16.mxu0 %v3536_v12 }
 0x64c   : > { %3301 = vmatpush3.bf16.msra.mxu0 %v3300_v26 }
 0x64d   : > { %3201 = vmatprep.subr.mxu0 %v3538_v15 }
 0x712   : > { %v1475_v51 = vpop.f32.mrb[6].mxu0 }
 0x713   : > { %v1479_v53 = vadd.f32 %v1475_v51, %v3767_v2  ;;  %v3149_v54 = vpop.f32.mrb[7].mxu0  ;;  %v1518_v2 = vld [vmem:[%s4225_s11 + $0x8] sm:$0xff] }
 0x714   : > { %v3285_v63 = vpack.c.bf16 %v1518_v2, %v1517_v62  ;;  %v2952_v54 = vld [vmem:[%s4277_s3 + $0x1] ss:$0 sm:$0xff] }
 0x715   : > { %v1487_v55 = vadd.f32 %v2943_v52, %v1479_v53 }
 0x716   : > { %3286 = vmatpush3.bf16.msra.mxu1 %v3285_v63 }
 0x717   : > { %v1490_v56 = vsel %vm604_vm0, %v1487_v55, 0.0  ;;  %3287 = vmatprep.subr.bf16.mxu1 %v3536_v12 }
 0x718   : > { %1491 = vadd.xlane.f32.xlu1 %v1490_v56  ;;  %v2953_v56 = vld [vmem:[%s4278_s4 + $0x1] ss:$0 sm:$0xff]  ;;  %s4296_s4 = sld [smem:[#allocation20_spill]] }
 0x71a   : > { %3289 = vmatpush3.bf16.msra.mxu1 %v3288_v3 }
 0x71b   : > { %3302 = vmatprep.subr.bf16.mxu1 %v3536_v12 }
 0x7a5   : > { %v1492_v57 = vpop.xlane.xlu1 %1491 }
 0x7a6   : > { %v1493_v58 = vmul.f32 0.03125, %v1492_v57 }
 0x7a8   : > { %v1494_v59 = vsub.f32 %v1487_v55, %v1493_v58 }
 0x7aa   : > { %v1495_v60 = vmul.f32 %v1494_v59, %v1494_v59 }
 0x7ac   : > { %v1496_v61 = vsel %vm604_vm0, %v1495_v60, 0.0 }
 0x7ad   : > { %1497 = vadd.xlane.f32.xlu0 %v1496_v61 }
 0x83a   : > { %v1498_v14 = vpop.xlane.xlu0 %1497 }
 0x83b   : > { %v1499_v16 = vmul.f32 0.03125, %v1498_v14 }
 0x83d   : > { %v1500_v17 = vadd.f32 1e-05, %v1499_v16 }
 0x83f   : > { %3413 = vrsqrt.f32 %v1500_v17 }
 0x849   : > { %v3414_v18 = vpop.eup %3413 }
 0x84a   : > { %v1502_v20 = vmul.f32 %v3414_v18, %v1494_v59  ;;  %v2959_v59 = vld [vmem:[%s4220_s6 + $0x1] ss:$0 sm:$0xff] }
 0x84c   : > { %v1509_v22 = vmul.f32 %v2944_v19, %v1502_v20 }
 0x84e   : > { %v1516_v23 = vadd.f32 %v2945_v21, %v1509_v22 }
 0x850   : > { %3159 = vmatmul.mubr.msk.f32.vlgmr.msra.gmra.mrb[12].mxu1 %vm604_vm0, %v1516_v23 }
 0x851   : > { %3188 = vmatprep.mubr.msk.f32.mxu1 %vm3537_vm1, %v3538_v15  ;;  %3304 = vmatpush3.bf16.msra.mxu1 %v3303_v46 }
 0x852   : > { %3305 = vmatprep.subr.bf16.mxu1 %v3536_v12 }
 0x855   : > { %3307 = vmatpush3.bf16.msra.mxu1 %v3306_v49 }
 0x856   : > { %3191 = vmatprep.subr.mxu1 %v3538_v15 }
 0x923   : > { %v1597_v28 = vpop.f32.mrb[12].mxu1 }
 0x924   : > { %v1598_v29 = vadd.f32 %v2946_v27, %v1597_v28  ;;  %v3160_v30 = vpop.f32.mrb[13].mxu1 }
 0x926   : > { %v1601_v31 = vmax.f32 %v1598_v29, 0.0 }
 0x928   : > { %3178 = vmatmul.mubr.msk.f32.vlgmr.msra.gmra.mrb[8].mxu0 %vm1610_vm5, %v1601_v31 }
 0x929   : > { %3203 = vmatprep.mubr.msk.f32.mxu0 %vm3537_vm1, %v3538_v15 }
 0x9fb   : > { %v1680_v32 = vpop.f32.mrb[8].mxu0 }
 0x9fc   : > { %v1684_v34 = vadd.f32 %v1680_v32, %v1487_v55  ;;  %v3179_v35 = vpop.f32.mrb[9].mxu0 }
 0x9fe   : > { %v3970_v36 = vadd.f32 %v2949_v33, %v1684_v34 }
 0xa00   : > { %v1697_v37 = vsel %vm604_vm0, %v3970_v36, 0.0 }
 0xa01   : > { %1698 = vadd.xlane.f32.xlu0 %v1697_v37 }
 0xa8e   : > { %v1699_v39 = vpop.xlane.xlu0 %1698 }
 0xa8f   : > { %v1700_v40 = vmul.f32 0.03125, %v1699_v39 }
 0xa91   : > { %v1701_v41 = vsub.f32 %v3970_v36, %v1700_v40 }
 0xa93   : > { %v1702_v42 = vmul.f32 %v1701_v41, %v1701_v41 }
 0xa95   : > { %v1703_v43 = vsel %vm604_vm0, %v1702_v42, 0.0 }
 0xa96   : > { %1704 = vadd.xlane.f32.xlu1 %v1703_v43 }
 0xb23   : > { %v1705_v50 = vpop.xlane.xlu1 %1704 }
 0xb24   : > { %v1706_v51 = vmul.f32 0.03125, %v1705_v50 }
 0xb26   : > { %v1707_v52 = vadd.f32 1e-05, %v1706_v51 }
 0xb28   : > { %3415 = vrsqrt.f32 %v1707_v52 }
 0xb32   : > { %v3416_v53 = vpop.eup %3415 }
 0xb33   : > { %v1709_v55 = vmul.f32 %v3416_v53, %v1701_v41 }
 0xb35   : > { %v1716_v57 = vmul.f32 %v2952_v54, %v1709_v55 }
 0xb37   : > { %v1723_v58 = vadd.f32 %v2953_v56, %v1716_v57 }
 0xb39   : > { %3189 = vmatmul.mubr.msk.f32.vlgmr.msra.gmra.mrb[14].mxu1 %vm604_vm0, %v1723_v58 }
 0xb3a   : > { %3193 = vmatprep.mubr.msk.f32.mxu1 %vm3537_vm1, %v3538_v15 }
 0xc0c   : > { %v1806_v60 = vpop.f32.mrb[14].mxu1 }
 0xc0d   : > { %v4002_v61 = vadd.f32 %v2959_v59, %v1806_v60  ;;  %v3190_v62 = vpop.f32.mrb[15].mxu1 }
 0xc0e   : > { %v2973_v62 = vld [vmem:[%s4221_s7 + $0x20] sm:$0xff] }
 0xc0f   : > { %1978 = vrot.lane.b32.xlu1 %v4002_v61, %s3541_s23  ;;  %1812 = vrot.lane.b32.xlu0 %v4002_v61, %s3539_s16  ;;  %v1810_v2 = vmul.f32 0.35355338, %v4002_v61  ;;  %s4285_s16 = smov 64   ;;  %s4286_s23 = smov 48  }
 0xc13   : > { %2143 = vrot.lane.b32.xlu0 %v4002_v61, %s4280_s21  ;;  %1976 = vrot.lane.b32.xlu1 %v1810_v2, %s4281_s0  ;;  %s2815_s21 = scalar_lea.sflag [#allocation4], %s3749_s24 }
 0xc17   : > { %2308 = vrot.lane.b32.xlu0 %v4002_v61, %s4282_s1  ;;  %2141 = vrot.lane.b32.xlu1 %v1810_v2, %s4283_s19  ;;  %s4293_s1 = sld [smem:[#allocation18_spill]] }
 0xc1b   : > { %2306 = vrot.lane.b32.xlu1 %v1810_v2, %s4284_s20 }
 0xc81   : > { %v1979_v63 = vpop.permute.xlu1 %1978  ;;  %v1813_v0 = vpop.permute.xlu0 %1812 }
 0xc82   : > { %3192 = vmatpush3.xpose.msk.msra.mxu1 %vm727_vm2, %v1813_v0  ;;  %3202 = vmatpush3.xpose.msk.msra.mxu0 %vm727_vm2, %v1979_v63  ;;  %v2975_v0 = vld [vmem:[%s4221_s7 + $0x30] sm:$0xff] }
 0xc83   : > { %3211 = vmatprep.subr.mxu0 %v3538_v15  ;;  %3196 = vmatprep.subr.mxu1 %v3538_v15 }
 0xc85   : > { %v2144_v1 = vpop.permute.xlu0 %2143  ;;  %v1977_v3 = vpop.permute.xlu1 %1976  ;;  %3194 = vmatmul.mubr.msk.f32.vlgmr.msra.gmra.mrb[16].mxu1 %vm727_vm2, %v1810_v2  ;;  %v2974_v2 = vld [vmem:[%s4221_s7 + $0x28] sm:$0xff] }
 0xc86   : > { %3204 = vmatmul.mubr.msk.f32.vlgmr.msra.gmra.mrb[10].mxu0 %vm727_vm2, %v1977_v3  ;;  %3198 = vmatprep.mubr.msk.f32.mxu1 %vm3537_vm1, %v3538_v15  ;;  %v3309_v63 = vpack.c.bf16 %v2974_v2, %v2973_v62  ;;  %v3001_v62 = vld [vmem:[%s4228_s14 + $0x1] ss:$0 sm:$0xff] }
 0xc87   : > { %3212 = vmatpush3.xpose.msk.msra.mxu0 %vm727_vm2, %v2144_v1  ;;  %3213 = vmatprep.mubr.msk.f32.mxu0 %vm3537_vm1, %v3538_v15  ;;  %v2976_v1 = vld [vmem:[%s4221_s7 + $0x38] sm:$0xff] }
 0xc88   : > { %3221 = vmatprep.subr.mxu0 %v3538_v15  ;;  %v3312_v3 = vpack.c.bf16 %v2976_v1, %v2975_v0 }
 0xc89   : > { %v2309_v4 = vpop.permute.xlu0 %2308  ;;  %v2142_v5 = vpop.permute.xlu1 %2141 }
 0xc8a   : > { %3214 = vmatmul.mubr.msk.f32.vlgmr.msra.gmra.mrb[12].mxu0 %vm727_vm2, %v2142_v5 }
 0xc8b   : > { %3222 = vmatpush3.xpose.msk.msra.mxu0 %vm727_vm2, %v2309_v4  ;;  %3223 = vmatprep.mubr.msk.f32.mxu0 %vm3537_vm1, %v3538_v15 }
 0xc8c   : > { %3308 = vmatprep.subr.bf16.mxu0 %v3536_v12 }
 0xc8d   : > { %v2307_v6 = vpop.permute.xlu1 %2306 }
 0xc8e   : > { %3224 = vmatmul.mubr.msk.f32.vlgmr.msra.gmra.mrb[14].mxu0 %vm727_vm2, %v2307_v6 }
 0xc8f   : > { %3239 = vmatprep.mubr.msk.f32.mxu0 %vm3537_vm1, %v3538_v15  ;;  %3310 = vmatpush3.bf16.msra.mxu0 %v3309_v63 }
 0xc90   : > { %3311 = vmatprep.subr.bf16.mxu0 %v3536_v12 }
 0xc93   : > { %3313 = vmatpush3.bf16.msra.mxu0 %v3312_v3 }
 0xc94   : > { %3320 = vmatprep.subr.bf16.mxu0 %v3536_v12 }
 0xd58   : > { %v1885_v7 = vpop.f32.mrb[16].mxu1 }
 0xd59   : > { %v1886_v8 = vadd.f32 %v3843_v38, %v1885_v7  ;;  %v3195_v9 = vpop.f32.mrb[17].mxu1  ;;  %v2050_v10 = vpop.f32.mrb[10].mxu0 }
 0xd5a   : > { %v2051_v11 = vadd.f32 %v3843_v38, %v2050_v10  ;;  %v3205_v13 = vpop.f32.mrb[11].mxu0 }
 0xd5b   : > { %v1889_v14 = vsel %vm727_vm2, %v1886_v8, -inf }
 0xd5c   : > { %1890 = vmax.xlane.f32.xlu0 %v1889_v14  ;;  %v2054_v16 = vsel %vm727_vm2, %v2051_v11, -inf }
 0xd5d   : > { %2055 = vmax.xlane.f32.xlu1 %v2054_v16  ;;  %v2215_v17 = vpop.f32.mrb[12].mxu0 }
 0xd5e   : > { %v2216_v18 = vadd.f32 %v3843_v38, %v2215_v17  ;;  %v3215_v19 = vpop.f32.mrb[13].mxu0 }
 0xd60   : > { %v2219_v20 = vsel %vm727_vm2, %v2216_v18, -inf }
 0xd61   : > { %v2380_v21 = vpop.f32.mrb[14].mxu0  ;;  %2220 = vmax.xlane.f32.xlu0 %v2219_v20 }
 0xd62   : > { %v2381_v22 = vadd.f32 %v3843_v38, %v2380_v21  ;;  %v3225_v23 = vpop.f32.mrb[15].mxu0  ;;  %v2979_v21 = vld [vmem:[%s4222_s8 + $0x1] ss:$0 sm:$0xff] }
 0xd64   : > { %v2384_v24 = vsel %vm727_vm2, %v2381_v22, -inf }
 0xd65   : > { %2385 = vmax.xlane.f32.xlu0 %v2384_v24 }
 0xd6e   : > { %1900 = vrot.lane.b32.xlu1 %v4002_v61, %s4285_s16  ;;  %s4294_s16 = sld [smem:[#allocation19_spill]] }
 0xde9   : > { %v1891_v25 = vpop.xlane.xlu0 %1890 }
 0xdea   : > { %v1892_v26 = vsub.f32 %v1886_v8, %v1891_v25  ;;  %v2056_v27 = vpop.xlane.xlu1 %2055 }
 0xdeb   : > { %v2057_v28 = vsub.f32 %v2051_v11, %v2056_v27 }
 0xdec   : > { %v1893_v29 = vmul.f32 1.442695, %v1892_v26 }
 0xded   : > { %v2058_v30 = vmul.f32 1.442695, %v2057_v28 }
 0xdee   : > { %3417 = vpow2.f32 %v1893_v29  ;;  %v1901_v31 = vpop.permute.xlu1 %1900  ;;  %v2221_v32 = vpop.xlane.xlu0 %2220 }
 0xdef   : > { %3419 = vpow2.f32 %v2058_v30  ;;  %v2222_v33 = vsub.f32 %v2216_v18, %v2221_v32  ;;  %3197 = vmatpush3.msra.mxu1 %v1901_v31  ;;  %v2986_v32 = vld [vmem:[%s4225_s11 + $0x30] sm:$0xff] }
 0xdf0   : > { %3206 = vmatprep.subr.mxu1 %v3538_v15 }
 0xdf1   : > { %v2223_v38 = vmul.f32 1.442695, %v2222_v33  ;;  %v2987_v33 = vld [vmem:[%s4225_s11 + $0x38] sm:$0xff] }
 0xdf2   : > { %v2386_v34 = vpop.xlane.xlu0 %2385 }
 0xdf3   : > { %3421 = vpow2.f32 %v2223_v38  ;;  %v2387_v35 = vsub.f32 %v2381_v22, %v2386_v34  ;;  %v3318_v38 = vpack.c.bf16 %v2987_v33, %v2986_v32  ;;  %v2991_v34 = vld [vmem:[%s4227_s13 + $0x40] sm:$0xff] }
 0xdf5   : > { %v2388_v37 = vmul.f32 1.442695, %v2387_v35  ;;  %v2992_v35 = vld [vmem:[%s4227_s13 + $0x48] sm:$0xff] }
 0xdf7   : > { %3423 = vpow2.f32 %v2388_v37  ;;  %v2993_v37 = vld [vmem:[%s4227_s13 + $0x50] sm:$0xff] }
 0xdf8   : > { %v3418_v39 = vpop.eup %3417 }
 0xdf9   : > { %v3420_v40 = vpop.eup %3419  ;;  %v1895_v41 = vsel %vm727_vm2, %v3418_v39, 0.0 }
 0xdfa   : > { %1896 = vadd.xlane.f32.xlu1 %v1895_v41  ;;  %v2060_v42 = vsel %vm727_vm2, %v3420_v40, 0.0 }
 0xdfb   : > { %2061 = vadd.xlane.f32.xlu0 %v2060_v42  ;;  %v2995_v42 = vld [vmem:[%s4227_s13 + $0x60] sm:$0xff] }
 0xdfd   : > { %v3422_v43 = vpop.eup %3421 }
 0xdfe   : > { %v2225_v44 = vsel %vm727_vm2, %v3422_v43, 0.0 }
 0xdff   : > { %2226 = vadd.xlane.f32.xlu1 %v2225_v44 }
 0xe01   : > { %v3424_v45 = vpop.eup %3423 }
 0xe02   : > { %v2390_v46 = vsel %vm727_vm2, %v3424_v45, 0.0 }
 0xe03   : > { %2391 = vadd.xlane.f32.xlu0 %v2390_v46 }
 0xe10   : > { %2230 = vrot.lane.b32.xlu1 %v4002_v61, %s4286_s23  ;;  %s4289_s23 = smov 8  }
 0xe14   : > { %2395 = vrot.lane.b32.xlu1 %v4002_v61, %s4287_s30  ;;  %s4290_s30 = smov 16  }
 0xe19   : > { %2065 = vrot.lane.b32.xlu0 %v4002_v61, %s4288_s15  ;;  %s4291_s15 = smov 24  }
 0xe87   : > { %v1897_v47 = vpop.xlane.xlu1 %1896 }
 0xe88   : > { %3425 = vrcp.f32 %v1897_v47  ;;  %v2062_v48 = vpop.xlane.xlu0 %2061 }
 0xe89   : > { %3427 = vrcp.f32 %v2062_v48 }
 0xe8c   : > { %v2227_v49 = vpop.xlane.xlu1 %2226 }
 0xe8d   : > { %3429 = vrcp.f32 %v2227_v49  ;;  %v2982_v49 = vld [vmem:[%s4223_s9 + $0x1] ss:$0 sm:$0xff] }
 0xe90   : > { %v2392_v50 = vpop.xlane.xlu0 %2391  ;;  %v2231_v56 = vpop.permute.xlu1 %2230 }
 0xe91   : > { %3431 = vrcp.f32 %v2392_v50 }
 0xe92   : > { %v3426_v51 = vpop.eup %3425 }
 0xe93   : > { %v1899_v52 = vmul.f32 %v3426_v51, %v3418_v39  ;;  %v3428_v53 = vpop.eup %3427  ;;  %v3321_v39 = vpack.c.bf16 %v2992_v35, %v2991_v34  ;;  %v2983_v51 = vld [vmem:[%s4224_s10 + $0x1] ss:$0 sm:$0xff] }
 0xe94   : > { %v2066_v54 = vpop.permute.xlu0 %2065  ;;  %v2064_v55 = vmul.f32 %v3428_v53, %v3420_v40  ;;  %v2396_v60 = vpop.permute.xlu1 %2395  ;;  %v2994_v40 = vld [vmem:[%s4227_s13 + $0x58] sm:$0xff] }
 0xe95   : > { %3199 = vmatmul.mubr.msk.f32.vlgmr.msra.gmra.mrb[18].mxu1 %vm727_vm2, %v1899_v52  ;;  %v3324_v41 = vpack.c.bf16 %v2994_v40, %v2993_v37 }
 0xe96   : > { %3207 = vmatpush3.msra.mxu1 %v2066_v54  ;;  %3208 = vmatprep.mubr.msk.f32.mxu1 %vm3537_vm1, %v3538_v15  ;;  %v2998_v54 = vld [vmem:[%s4227_s13 + $0x78] sm:$0xff] }
 0xe97   : > { %3216 = vmatprep.subr.mxu1 %v3538_v15  ;;  %v3430_v57 = vpop.eup %3429 }
 0xe98   : > { %v2229_v58 = vmul.f32 %v3430_v57, %v3422_v43  ;;  %v2996_v43 = vld [vmem:[%s4227_s13 + $0x68] sm:$0xff] }
 0xe99   : > { %3209 = vmatmul.mubr.msk.f32.vlgmr.msra.gmra.mrb[20].mxu1 %vm727_vm2, %v2064_v55  ;;  %v3327_v44 = vpack.c.bf16 %v2996_v43, %v2995_v42 }
 0xe9a   : > { %3217 = vmatpush3.msra.mxu1 %v2231_v56  ;;  %3218 = vmatprep.mubr.msk.f32.mxu1 %vm3537_vm1, %v3538_v15  ;;  %v2989_v56 = vld [vmem:[%s4226_s12 + $0x1] ss:$0 sm:$0xff] }
 0xe9b   : > { %3226 = vmatprep.subr.mxu1 %v3538_v15  ;;  %v3432_v59 = vpop.eup %3431 }
 0xe9c   : > { %v2394_v61 = vmul.f32 %v3432_v59, %v3424_v45 }
 0xe9d   : > { %3219 = vmatmul.mubr.msk.f32.vlgmr.msra.gmra.mrb[22].mxu1 %vm727_vm2, %v2229_v58 }
 0xe9e   : > { %3227 = vmatpush3.msra.mxu1 %v2396_v60  ;;  %3228 = vmatprep.mubr.msk.f32.mxu1 %vm3537_vm1, %v3538_v15 }
 0xe9f   : > { %3314 = vmatprep.subr.bf16.mxu1 %v3536_v12 }
 0xea1   : > { %3229 = vmatmul.mubr.msk.f32.vlgmr.msra.gmra.mrb[24].mxu1 %vm727_vm2, %v2394_v61 }
 0xea2   : > { %3250 = vmatprep.mubr.msk.f32.mxu1 %vm3537_vm1, %v3538_v15 }
 0xf68   : > { %v1972_v4 = vpop.f32.mrb[18].mxu1 }
 0xf69   : > { %v3200_v5 = vpop.f32.mrb[19].mxu1 }
 0xf6c   : > { %v2137_v6 = vpop.f32.mrb[20].mxu1 }
 0xf6d   : > { %2472 = vrot.lane.b32.xlu0 %v2137_v6, %s4289_s23  ;;  %v3210_v7 = vpop.f32.mrb[21].mxu1  ;;  %s3005_s23 = sshll.u32 %s3665_s28, 7  ;;  %s3553_s28 = smov [#allocation5]  }
 0xf6e   : > { %s4169_s5 = scalar_lea.hbm %s4296_s4, %s3005_s23 }
 0xf70   : > { %v2302_v8 = vpop.f32.mrb[22].mxu1 }
 0xf71   : > { %2476 = vrot.lane.b32.xlu1 %v2302_v8, %s4290_s30  ;;  %v3220_v9 = vpop.f32.mrb[23].mxu1  ;;  %s4295_s30 = sshll.u32 %s3749_s24, 3 }
 0xf74   : > { %v2467_v10 = vpop.f32.mrb[24].mxu1 }
 0xf75   : > { %2480 = vrot.lane.b32.xlu0 %v2467_v10, %s4291_s15  ;;  %v3230_v11 = vpop.f32.mrb[25].mxu1  ;;  %s585_s15 = scalar_lea.vmem [#allocation5], %s4295_s30 }
 0xf76   : > { %s2828_s18 = sshll.u32 %s585_s15, 4  ;;  %s4171_s18 = int_to_ptr.vmem [resolvable:$true] %s2828_s18 }
 0xf77   : > { %s3467_s0 = scalar_lea.vmem %s4171_s18, 128 }
 0xf78   : > { %p3468_p6 = scmp.ne.s32.totalorder %s4171_s18, %s3467_s0 }
 0xf7a   : > { %p3469_p13 = pnand %p3468_p6, %p4297_p12 }
 0xf7c   : > { %p3470_p7 = pneg %p3469_p13 }
 0xfdf   : > { %v2473_v13 = vpop.permute.xlu0 %2472 }
 0xfe0   : > { %v2483_v16 = vsel %vm727_vm2, %v1972_v4, %v2473_v13  ;;  %v3002_v13 = vld [vmem:[%s4293_s1] ss:$0 sm:$0xff]  ;;  %s3471_s1 = sshll.u32 %s3553_s28, 4  ;;  %s3472_s1 = int_to_ptr.vmem [resolvable:$false] %s3471_s1 }
 0xfe1   : > { %s3473_s19 = scalar_lea.vmem %s3472_s1, 256  ;;  %p3474_p10 = scmp.lt.s32.totalorder %s4171_s18, %s3472_s1 }
 0xfe2   : > { %p3475_p2 = scmp.lt.s32.totalorder %s3473_s19, %s3467_s0 }
 0xfe3   : > { %v2477_v14 = vpop.permute.xlu1 %2476 }
 0xfe4   : > { %v2484_v17 = vsel %vm1398_vm3, %v2483_v16, %v2477_v14  ;;  %v3003_v16 = vld [vmem:[%s4294_s16] ss:$0 sm:$0xff]  ;;  %p3476_p4 = por %p3475_p2, %p3474_p10 }
 0xfe6   : > { %p3477_p5 = pnand %p3476_p4, %p3470_p7 }
 0xfe7   : > { %v2481_v18 = vpop.permute.xlu0 %2480 }
 0xfe8   : > { %v2485_v19 = vsel %vm1400_vm4, %v2484_v17, %v2481_v18 }
 0xfe9   : > { %3240 = vmatmul.mubr.msk.f32.vlgmr.msra.gmra.mrb[16].mxu0 %vm604_vm0, %v2485_v19 }
 0xfea   : > { %3269 = vmatprep.mubr.msk.f32.mxu0 %vm3537_vm1, %v3538_v15  ;;  %v2984_v15 = vld [vmem:[%s4225_s11 + $0x20] sm:$0xff]  ;;  %3322 = vmatpush3.bf16.msra.mxu0 %v3321_v39 }
 0xfeb   : > { %3323 = vmatprep.subr.bf16.mxu0 %v3536_v12 }
 0xfee   : > { %3325 = vmatpush3.bf16.msra.mxu0 %v3324_v41 }
 0xfef   : > { %3326 = vmatprep.subr.bf16.mxu0 %v3536_v12 }
 0xff2   : > { %3328 = vmatpush3.bf16.msra.mxu0 %v3327_v44 }
 0xff3   : > { %3329 = vmatprep.subr.bf16.mxu0 %v3536_v12 }
0x10bc   : > { %v2560_v20 = vpop.f32.mrb[16].mxu0 }
0x10bd   : > { %v2564_v22 = vadd.f32 %v2560_v20, %v3970_v36  ;;  %v3241_v23 = vpop.f32.mrb[17].mxu0  ;;  %v2985_v36 = vld [vmem:[%s4225_s11 + $0x28] sm:$0xff] }
0x10be   : > { %v3315_v31 = vpack.c.bf16 %v2985_v36, %v2984_v15 }
0x10bf   : > { %v2573_v24 = vadd.f32 %v2979_v21, %v2564_v22 }
0x10c0   : > { %3316 = vmatpush3.bf16.msra.mxu1 %v3315_v31 }
0x10c1   : > { %v2578_v25 = vsel %vm604_vm0, %v2573_v24, 0.0  ;;  %3317 = vmatprep.subr.bf16.mxu1 %v3536_v12  ;;  %v2997_v12 = vld [vmem:[%s4227_s13 + $0x70] sm:$0xff] }
0x10c2   : > { %2579 = vadd.xlane.f32.xlu1 %v2578_v25  ;;  %v3330_v55 = vpack.c.bf16 %v2998_v54, %v2997_v12 }
0x10c4   : > { %3319 = vmatpush3.bf16.msra.mxu1 %v3318_v38  ;;  %3331 = vmatpush3.bf16.msra.mxu0 %v3330_v55 }
0x114f   : > { %v2580_v26 = vpop.xlane.xlu1 %2579 }
0x1150   : > { %v2581_v27 = vmul.f32 0.03125, %v2580_v26 }
0x1152   : > { %v2582_v28 = vsub.f32 %v2573_v24, %v2581_v27 }
0x1154   : > { %v2583_v29 = vmul.f32 %v2582_v28, %v2582_v28 }
0x1156   : > { %v2584_v30 = vsel %vm604_vm0, %v2583_v29, 0.0 }
0x1157   : > { %2585 = vadd.xlane.f32.xlu0 %v2584_v30 }
0x11e4   : > { %v2586_v45 = vpop.xlane.xlu0 %2585 }
0x11e5   : > { %v2587_v46 = vmul.f32 0.03125, %v2586_v45 }
0x11e7   : > { %v2588_v47 = vadd.f32 1e-05, %v2587_v46 }
0x11e9   : > { %3433 = vrsqrt.f32 %v2588_v47 }
0x11f3   : > { %v3434_v48 = vpop.eup %3433 }
0x11f4   : > { %v2590_v50 = vmul.f32 %v3434_v48, %v2582_v28 }
0x11f6   : > { %v2597_v52 = vmul.f32 %v2982_v49, %v2590_v50 }
0x11f8   : > { %v2604_v53 = vadd.f32 %v2983_v51, %v2597_v52 }
0x11fa   : > { %3251 = vmatmul.mubr.msk.f32.vlgmr.msra.gmra.mrb[26].mxu1 %vm604_vm0, %v2604_v53 }
0x12cd   : > { %v2687_v57 = vpop.f32.mrb[26].mxu1 }
0x12ce   : > { %v2688_v58 = vadd.f32 %v2989_v56, %v2687_v57  ;;  %v3252_v59 = vpop.f32.mrb[27].mxu1 }
0x12d0   : > { %v2691_v60 = vmax.f32 %v2688_v58, 0.0 }
0x12d2   : > { %3270 = vmatmul.mubr.msk.f32.vlgmr.msra.gmra.mrb[18].mxu0 %vm1610_vm5, %v2691_v60 }
0x13a5   : > { %v2770_v61 = vpop.f32.mrb[18].mxu0 }
0x13a6   : > { %v2774_v2 = vadd.f32 %v2770_v61, %v2573_v24  ;;  %v3271_v63 = vpop.f32.mrb[19].mxu0 }
0x13a8   : > { %v2783_v0 = vadd.f32 %v3001_v62, %v2774_v2 }
0x13aa   : > { %v2786_v1 = vsel %vm604_vm0, %v2783_v0, 0.0 }
0x13ab   : > { %2787 = vadd.xlane.f32.xlu0 %v2786_v1 }
0x1438   : > { %v2788_v3 = vpop.xlane.xlu0 %2787 }
0x1439   : > { %v2789_v4 = vmul.f32 0.03125, %v2788_v3 }
0x143b   : > { %v2790_v5 = vsub.f32 %v2783_v0, %v2789_v4 }
0x143d   : > { %v2791_v6 = vmul.f32 %v2790_v5, %v2790_v5 }
0x143f   : > { %v2792_v7 = vsel %vm604_vm0, %v2791_v6, 0.0 }
0x1440   : > { %2793 = vadd.xlane.f32.xlu1 %v2792_v7 }
0x14cd   : > { %v2794_v8 = vpop.xlane.xlu1 %2793 }
0x14ce   : > { %v2795_v9 = vmul.f32 0.03125, %v2794_v8 }
0x14d0   : > { %v2796_v10 = vadd.f32 1e-06, %v2795_v9 }
0x14d2   : > { %3435 = vrsqrt.f32 %v2796_v10 }
0x14dc   : > { %v3436_v11 = vpop.eup %3435 }
0x14dd   : > { %v2798_v14 = vmul.f32 %v3436_v11, %v2790_v5 }
0x14df   : > { %v2805_v17 = vmul.f32 %v3002_v13, %v2798_v14 }
0x14e1   : > { %v2812_v18 = vadd.f32 %v3003_v16, %v2805_v17 }
0x14e3   : > { %2813 = vst.msk [vmem:[%s585_s15] sm:$0xff] %vm604_vm0, %v2812_v18 }
0x14e4   : > { %3480 = shalt.err (!%p3477_p5)
}
0x14e5   : > { %s3481_s2 = scalar_lea.hbm %s4169_s5, 128  ;;  %s3485_s20 = scalar_lea.hbm %s4296_s4, 256 }
0x14e6   : > { %p3482_p8 = scmp.ne.s32.totalorder %s4169_s5, %s3481_s2  ;;  %p3486_p1 = scmp.lt.u32.totalorder %s4169_s5, %s4296_s4 }
0x14e7   : > { %p3487_p3 = scmp.lt.u32.totalorder %s3485_s20, %s3481_s2  ;;  %p3489_p6 = scmp.lt.u32.totalorder %s3481_s2, %s4169_s5 }
0x14e8   : > { %p3483_p9 = pnand %p3482_p8, %p4297_p12 }
0x14e9   : > { %p3488_p11 = por %p3487_p3, %p3486_p1 }
0x14ea   : > { %p3484_p0 = pneg %p3483_p9 }
0x14eb   : > { %p3490_p13 = por %p3489_p6, %p3488_p11 }
0x14ed   : > { %p3491_p7 = pnand %p3490_p13, %p3484_p0 }
0x14ef   : > { %3494 = shalt.err (!%p3491_p7)
}
0x14f0   : > { %3334 = dma.vmem_to_hbm [thread:$0]  (%p4297_p12), %s4171_s18, 128, %s4169_s5, %s2815_s21  }
0x14f1 PF: > { %s4298_s30 = sld [smem:[#allocation8_spill]]  ;;  %p4299_p10 = scmp.ne.s32.totalorder %s4269_s22, 0 }
0x14f2   : > { %p4300_p2 = scmp.ge.s32.totalorder %s3533_s27, 2 }
0x14f4   : > { %p3341_p4 = pnand %p4300_p2, %p4299_p10 }
0x14f7   : > { %s2840_s15 = sand.u32 1, %s4298_s30  }
0x14f8   : > { %s2841_s0 = scalar_lea.sflag [#allocation4], %s2840_s15 }
0x14f9   : > { %3516 = dma.done.wait (!%p3341_p4), %s2841_s0, 128  }
0x14fa   : > { %3518 = vsyncadd (!%p3341_p4), %s2841_s0, 4294967168  ;;  %s4301_s27 = sld [smem:[#allocation9_spill]]  ;;  %s4302_s28 = sld [smem:[#allocation10_spill]] }
0x14fb   : > { %s4303_s24 = smov %s3525_s25  ;;  %s4304_s25 = smov %s3529_s26 }
0x1500   : > { %p30_p5 = scmp.ge.s32.totalorder %s4301_s27, 4   ;;  %s4305_s26 = smov %s4302_s28 }
0x1502   :  { %32 = sbr.rel (!%p30_p5) target bundleno = 15 (0xf), region = 151 }
0x1509   :  { %2846 = vsyncpa [#allocation3], 1 }
0x150a   :  { %2848 = vsyncpa [#allocation3 + $0x1], 1 }
0x150b   :  { %2849 = vsyncpa [#allocation4], 1 }
0x150c   :  { %2851 = vsyncpa [#allocation4 + $0x1], 1 }

</bundles_post_ra>
